<compile_context>
chip_gen: v6e
topology: v6e:2x2x1
jax: 0.10.0
libtpu: 0.0.40
codegen_flags: <defaults>
</compile_context>

<pallas_src>
import functools
import math

import jax
import jax.numpy as jnp
from jax import lax
from jax.experimental import pallas as pl
from jax.experimental.pallas import tpu as pltpu


# ---------------------------------------------------------------------------
# One-time parameter preparation (kept out of the per-call path).
# ---------------------------------------------------------------------------
def prepare_params(params, num_heads):
    """Stack / head-split / bf16-cast the projection weights once."""
    d_model = params["wq"].shape[0]
    assert d_model % num_heads == 0, "d_model must be divisible by num_heads"
    depth = d_model // num_heads

    def split_w(w):   # (D, D) -> (H, D, depth): per-head output columns.
        return jnp.transpose(w.reshape(d_model, num_heads, depth), (1, 0, 2))

    def split_b(b):   # (D,) -> (H, 1, depth)
        return b.reshape(num_heads, 1, depth)

    return {
        # Stacked q|k|v projection weights: one weight DMA stream, bf16 MXU operands.
        "wqkv": jnp.stack([split_w(params["wq"]), split_w(params["wk"]),
                           split_w(params["wv"])]).astype(jnp.bfloat16),   # (3,H,D,depth)
        "bqkv": jnp.stack([split_b(params["bq"]), split_b(params["bk"]),
                           split_b(params["bv"])]).astype(jnp.float32),    # (3,H,1,depth)
        # Output projection pre-split into per-head (depth, D) slabs.
        "wo": params["wo"].reshape(num_heads, depth, d_model).astype(jnp.bfloat16),
        "bo": params["bo"].reshape(1, d_model).astype(jnp.float32),
    }


# ---------------------------------------------------------------------------
# Kernel A: fused Q/K/V projection, head-major bf16 outputs.
# ---------------------------------------------------------------------------
def qkv_projection_kernel(q_ref, k_ref, v_ref, wqkv_ref, bqkv_ref,
                          qp_ref, kp_ref, vp_ref, *, num_heads, scale):
    qx = q_ref[0].astype(jnp.bfloat16)   # (ts, D)
    kx = k_ref[0].astype(jnp.bfloat16)
    vx = v_ref[0].astype(jnp.bfloat16)
    # Static unroll over heads: each iteration is one MXU dot + bias + cast with
    # a tiny live set, so unrolling is safe.  Head-major (ts, depth) stores avoid
    # non-128-aligned lane slices downstream when depth < 128.
    for h in range(num_heads):
        qh = jnp.dot(qx, wqkv_ref[0, h], preferred_element_type=jnp.float32) + bqkv_ref[0, h]
        kh = jnp.dot(kx, wqkv_ref[1, h], preferred_element_type=jnp.float32) + bqkv_ref[1, h]
        vh = jnp.dot(vx, wqkv_ref[2, h], preferred_element_type=jnp.float32) + bqkv_ref[2, h]
        # Fold the 1/sqrt(depth) attention scale into q (cheaper than scaling logits).
        qp_ref[0, h] = (qh * scale).astype(qp_ref.dtype)
        kp_ref[0, h] = kh.astype(kp_ref.dtype)
        vp_ref[0, h] = vh.astype(vp_ref.dtype)


# ---------------------------------------------------------------------------
# Kernel B: flash attention (online softmax over KV tiles) + fused output proj.
# Grid = (B, q_tiles, H, kv_tiles); heads + kv are "arbitrary" reduction axes.
# ---------------------------------------------------------------------------
def flash_attention_kernel(qp_ref, kp_ref, vp_ref, mask_ref, wo_ref, bo_ref,
                           o_ref, m_ref, l_ref, acc_ref):
    h = pl.program_id(2)
    ki = pl.program_id(3)

    @pl.when(ki == 0)
    def _():
        m_ref[...] = jnp.full(m_ref.shape, -jnp.inf, jnp.float32)
        l_ref[...] = jnp.zeros(l_ref.shape, jnp.float32)
        acc_ref[...] = jnp.zeros(acc_ref.shape, jnp.float32)

    q = qp_ref[0, 0]    # (tq, depth) bf16, pre-scaled by 1/sqrt(depth)
    k = kp_ref[0, 0]    # (tk, depth) bf16
    v = vp_ref[0, 0]    # (tk, depth) bf16

    # QK^T without materializing a transpose: contract the last dims of both.
    logits = lax.dot_general(q, k, (((1,), (1,)), ((), ())),
                             preferred_element_type=jnp.float32)        # (tq, tk) f32
    # Mask math stays in f32 (mask itself may be streamed in bf16).
    logits = logits + mask_ref[0, 0].astype(jnp.float32) * jnp.float32(-1e9)

    m_prev = m_ref[...]
    m_new = jnp.maximum(m_prev, jnp.max(logits, axis=-1, keepdims=True))
    alpha = jnp.exp(m_prev - m_new)
    p = jnp.exp(logits - m_new)                                         # f32
    l_ref[...] = alpha * l_ref[...] + jnp.sum(p, axis=-1, keepdims=True)
    acc_ref[...] = alpha * acc_ref[...] + jnp.dot(
        p.astype(v.dtype), v, preferred_element_type=jnp.float32)       # bf16 MXU operands
    m_ref[...] = m_new

    @pl.when(ki == pl.num_programs(3) - 1)
    def _():
        # Deferred normalization: rescale the small (tq, depth) context, then apply
        # this head's (depth, D) output-projection slab and accumulate into the
        # resident f32 output block (lane-dense (tq, D) stores, no concat).
        ctx = acc_ref[...] * pl.reciprocal(l_ref[...], approx=True)
        contrib = jnp.dot(ctx.astype(wo_ref.dtype), wo_ref[0],
                          preferred_element_type=jnp.float32)           # (tq, D)

        @pl.when(h == 0)
        def _():
            o_ref[0] = (contrib + bo_ref[...]).astype(o_ref.dtype)

        @pl.when(h > 0)
        def _():
            o_ref[0] = (o_ref[0].astype(jnp.float32) + contrib).astype(o_ref.dtype)


# ---------------------------------------------------------------------------
# Helpers.
# ---------------------------------------------------------------------------
def _pick_tile(size, target, align):
    """Largest divisor of `size` <= target that is a multiple of `align`
    (falls back to the full extent, which Mosaic's tiling rule always allows)."""
    if size <= target:
        return size
    for cand in range(min(target, size), 0, -1):
        if size % cand == 0 and cand % align == 0:
            return cand
    return size


def _vmem_limit_bytes(block_nbytes):
    # Conservatively assume every block is double-buffered, add slack, clamp.
    est = int(1.25 * sum(2 * int(b) for b in block_nbytes)) + (2 << 20)
    return int(min(128 << 20, max(32 << 20, est)))


def _const_spec(shape, index_map, single_buffer):
    # Constant-index weight blocks: single-buffer them (their index never
    # changes, so double-buffering only doubles resident VMEM).
    if single_buffer:
        return pl.BlockSpec(shape, index_map, pipeline_mode=pl.Buffered(1))
    return pl.BlockSpec(shape, index_map)


# ---------------------------------------------------------------------------
# Forward wrapper.
# ---------------------------------------------------------------------------
def multi_head_attention(q, k, v, mask, prepped, *, num_heads,
                         q_tile=None, kv_tile=None, seq_tile=None,
                         single_buffer_weights=True):
    """q, k, v: [B, S, D]; mask: [B, 1, S, S]; prepped: prepare_params(...) output."""
    B, S, D = q.shape
    assert k.shape == (B, S, D) and v.shape == (B, S, D), "q/k/v must share [B, S, D]"
    assert mask.shape == (B, 1, S, S), "mask must be [B, 1, S, S]"
    assert D % num_heads == 0, "d_model must be divisible by num_heads"
    depth = D // num_heads
    scale = 1.0 / math.sqrt(depth)
    bf16 = jnp.bfloat16

    wqkv, bqkv, wo, bo = prepped["wqkv"], prepped["bqkv"], prepped["wo"], prepped["bo"]

    # Tile sizes.  On v6e (128 MiB VMEM) a q-tile target of 256 is typically
    # better; 128 is the default so the same config also fits v7x's 64 MiB VMEM.
    ts = seq_tile or _pick_tile(S, 256, 8)          # projection sequence tile
    tq = q_tile or _pick_tile(S, 128, 8)            # attention query tile
    tk = kv_tile or _pick_tile(S, 128, 128)         # attention KV tile (mask needs %128 or full)
    assert S % ts == 0 and S % tq == 0 and S % tk == 0

    # --------------------------- 1) QKV projection (computed exactly once) ---
    proj_kernel = functools.partial(qkv_projection_kernel,
                                    num_heads=num_heads, scale=scale)
    hs_shape = jax.ShapeDtypeStruct((B, num_heads, S, depth), bf16)
    proj_blocks = ([ts * D * 4] * 3 + [wqkv.size * 2, bqkv.size * 4]
                   + [num_heads * ts * depth * 2] * 3)
    qp, kp, vp = pl.pallas_call(
        proj_kernel,
        out_shape=(hs_shape, hs_shape, hs_shape),
        grid_spec=pltpu.PrefetchScalarGridSpec(
            num_scalar_prefetch=0,
            grid=(B, S // ts),
            in_specs=[
                pl.BlockSpec((1, ts, D), lambda b, t: (b, t, 0)),            # q tile
                pl.BlockSpec((1, ts, D), lambda b, t: (b, t, 0)),            # k tile
                pl.BlockSpec((1, ts, D), lambda b, t: (b, t, 0)),            # v tile
                _const_spec((3, num_heads, D, depth), lambda b, t: (0, 0, 0, 0),
                            single_buffer_weights),                          # wq|wk|wv
                _const_spec((3, num_heads, 1, depth), lambda b, t: (0, 0, 0, 0),
                            single_buffer_weights),                          # bq|bk|bv
            ],
            out_specs=[
                pl.BlockSpec((1, num_heads, ts, depth), lambda b, t: (b, 0, t, 0)),
                pl.BlockSpec((1, num_heads, ts, depth), lambda b, t: (b, 0, t, 0)),
                pl.BlockSpec((1, num_heads, ts, depth), lambda b, t: (b, 0, t, 0)),
            ],
        ),
        compiler_params=pltpu.CompilerParams(
            dimension_semantics=("parallel", "parallel"),
            vmem_limit_bytes=_vmem_limit_bytes(proj_blocks)),
    )(q, k, v, wqkv, bqkv)

    # ------------------ 2) flash attention + fused per-head output projection ---
    attn_blocks = [tq * depth * 2, tk * depth * 2, tk * depth * 2,
                   tq * tk * mask.dtype.itemsize, depth * D * 2, D * 4,
                   tq * D * 4, tq * (depth + 2) * 4]
    out = pl.pallas_call(
        flash_attention_kernel,
        out_shape=jax.ShapeDtypeStruct((B, S, D), q.dtype),
        grid_spec=pltpu.PrefetchScalarGridSpec(
            num_scalar_prefetch=0,
            grid=(B, S // tq, num_heads, S // tk),
            in_specs=[
                pl.BlockSpec((1, 1, tq, depth), lambda b, qi, h, ki: (b, h, qi, 0)),  # q head tile
                pl.BlockSpec((1, 1, tk, depth), lambda b, qi, h, ki: (b, h, ki, 0)),  # k head tile
                pl.BlockSpec((1, 1, tk, depth), lambda b, qi, h, ki: (b, h, ki, 0)),  # v head tile
                pl.BlockSpec((1, 1, tq, tk), lambda b, qi, h, ki: (b, 0, qi, ki)),    # mask tile
                pl.BlockSpec((1, depth, D), lambda b, qi, h, ki: (h, 0, 0)),          # wo slab
                _const_spec((1, D), lambda b, qi, h, ki: (0, 0),
                            single_buffer_weights),                                   # bo
            ],
            out_specs=pl.BlockSpec((1, tq, D), lambda b, qi, h, ki: (b, qi, 0)),
            scratch_shapes=[
                pltpu.VMEM((tq, 1), jnp.float32),       # running max   m
                pltpu.VMEM((tq, 1), jnp.float32),       # running sum   l
                pltpu.VMEM((tq, depth), jnp.float32),   # unnormalized context
            ],
        ),
        compiler_params=pltpu.CompilerParams(
            dimension_semantics=("parallel", "parallel", "arbitrary", "arbitrary"),
            vmem_limit_bytes=_vmem_limit_bytes(attn_blocks)),
    )(qp, kp, vp, mask, wo, bo)
    return out


# ---------------------------------------------------------------------------
# Pure-JAX reference mirroring the PyTorch module (f32 throughout).
# ---------------------------------------------------------------------------
def reference_mha(q, k, v, mask, params, *, num_heads):
    B, S, D = q.shape
    depth = D // num_heads
    qp = (q @ params["wq"] + params["bq"]).reshape(B, S, num_heads, depth).transpose(0, 2, 1, 3)
    kp = (k @ params["wk"] + params["bk"]).reshape(B, S, num_heads, depth).transpose(0, 2, 1, 3)
    vp = (v @ params["wv"] + params["bv"]).reshape(B, S, num_heads, depth).transpose(0, 2, 1, 3)
    logits = jnp.einsum("bhqd,bhkd->bhqk", qp, kp) / jnp.sqrt(jnp.float32(depth))
    logits = logits + mask * (-1e9)
    attn = jax.nn.softmax(logits, axis=-1)
    out = jnp.einsum("bhqk,bhkd->bhqd", attn, vp)
    out = out.transpose(0, 2, 1, 3).reshape(B, S, D)
    return out @ params["wo"] + params["bo"]


if __name__ == "__main__":
    B, S, D, H = 2, 8, 32, 4

    key = jax.random.PRNGKey(0)
    keys = jax.random.split(key, 12)

    limit = 1.0 / math.sqrt(D)
    params = {
        "wq": jax.random.uniform(keys[0], (D, D), jnp.float32, -limit, limit),
        "bq": jax.random.uniform(keys[1], (D,), jnp.float32, -limit, limit),
        "wk": jax.random.uniform(keys[2], (D, D), jnp.float32, -limit, limit),
        "bk": jax.random.uniform(keys[3], (D,), jnp.float32, -limit, limit),
        "wv": jax.random.uniform(keys[4], (D, D), jnp.float32, -limit, limit),
        "bv": jax.random.uniform(keys[5], (D,), jnp.float32, -limit, limit),
        "wo": jax.random.uniform(keys[6], (D, D), jnp.float32, -limit, limit),
        "bo": jax.random.uniform(keys[7], (D,), jnp.float32, -limit, limit),
    }
    prepped = prepare_params(params, H)   # one-time parameter prep (hoisted)

    q = jax.random.normal(keys[8], (B, S, D), jnp.float32)
    k = jax.random.normal(keys[9], (B, S, D), jnp.float32)
    v = jax.random.normal(keys[10], (B, S, D), jnp.float32)
    causal = jnp.triu(jnp.ones((S, S), jnp.float32), k=1)     # 1.0 = masked
    mask = jnp.broadcast_to(causal, (B, 1, S, S))
    # 0/1 masks are exact in bf16; streaming the mask in bf16 halves its HBM traffic.
    mask_bf16 = mask.astype(jnp.bfloat16)

    try:
        out = multi_head_attention(q, k, v, mask_bf16, prepped, num_heads=H)
        out = jax.block_until_ready(out)
    except Exception:
        # Fallback for Pallas builds without BlockSpec pipeline_mode support:
        # identical kernels, default double-buffered weight blocks.
        out = multi_head_attention(q, k, v, mask_bf16, prepped, num_heads=H,
                                   single_buffer_weights=False)
        out = jax.block_until_ready(out)

    ref = reference_mha(q, k, v, mask, params, num_heads=H)
    assert out.shape == ref.shape
    # bf16 MXU operands -> loosened tolerance vs the pure-f32 reference.
    assert jnp.allclose(out, ref, atol=2e-2, rtol=2e-2), "mismatch vs reference"

    print("KERNEL_OK")
</pallas_src>

<mosaic_0001>
module attributes {stable_mosaic.version = 11 : i64} {
  func.func @qkv_projection_kernel(%arg0: i32, %arg1: i32, %arg2: memref<1x8x32xf32, #tpu.memory_space<vmem>>, %arg3: memref<1x8x32xf32, #tpu.memory_space<vmem>>, %arg4: memref<1x8x32xf32, #tpu.memory_space<vmem>>, %arg5: memref<3x4x32x8xbf16, #tpu.memory_space<vmem>>, %arg6: memref<3x4x1x8xf32, #tpu.memory_space<vmem>>, %arg7: memref<1x4x8x8xbf16, #tpu.memory_space<vmem>>, %arg8: memref<1x4x8x8xbf16, #tpu.memory_space<vmem>>, %arg9: memref<1x4x8x8xbf16, #tpu.memory_space<vmem>>) attributes {dimension_semantics = [#tpu.dimension_semantics<parallel>, #tpu.dimension_semantics<parallel>], iteration_bounds = array<i64: 2, 1>, scalar_prefetch = 0 : i64, scratch_operands = 0 : i64, tpu.core_type = #tpu.core_type<tc>, window_params = [{transform_indices = @transform_0, window_bounds = array<i64: 1, 8, 32>}, {transform_indices = @transform_1, window_bounds = array<i64: 1, 8, 32>}, {transform_indices = @transform_2, window_bounds = array<i64: 1, 8, 32>}, {pipeline_mode = #tpu.pipeline_mode<synchronous>, transform_indices = @transform_3, window_bounds = array<i64: 3, 4, 32, 8>}, {pipeline_mode = #tpu.pipeline_mode<synchronous>, transform_indices = @transform_4, window_bounds = array<i64: 3, 4, 1, 8>}, {transform_indices = @transform_5, window_bounds = array<i64: 1, 4, 8, 8>}, {transform_indices = @transform_6, window_bounds = array<i64: 1, 4, 8, 8>}, {transform_indices = @transform_7, window_bounds = array<i64: 1, 4, 8, 8>}]} {
    %c0 = arith.constant 0 : index
    %c0_0 = arith.constant 0 : index
    %c0_1 = arith.constant 0 : index
    %0 = vector.load %arg2[%c0, %c0_0, %c0_1] : memref<1x8x32xf32, #tpu.memory_space<vmem>>, vector<1x8x32xf32>
    %1 = vector.shape_cast %0 : vector<1x8x32xf32> to vector<8x32xf32>
    %2 = arith.truncf %1 : vector<8x32xf32> to vector<8x32xbf16>
    %c0_2 = arith.constant 0 : index
    %c0_3 = arith.constant 0 : index
    %c0_4 = arith.constant 0 : index
    %3 = vector.load %arg3[%c0_2, %c0_3, %c0_4] : memref<1x8x32xf32, #tpu.memory_space<vmem>>, vector<1x8x32xf32>
    %4 = vector.shape_cast %3 : vector<1x8x32xf32> to vector<8x32xf32>
    %5 = arith.truncf %4 : vector<8x32xf32> to vector<8x32xbf16>
    %c0_5 = arith.constant 0 : index
    %c0_6 = arith.constant 0 : index
    %c0_7 = arith.constant 0 : index
    %6 = vector.load %arg4[%c0_5, %c0_6, %c0_7] : memref<1x8x32xf32, #tpu.memory_space<vmem>>, vector<1x8x32xf32>
    %7 = vector.shape_cast %6 : vector<1x8x32xf32> to vector<8x32xf32>
    %8 = arith.truncf %7 : vector<8x32xf32> to vector<8x32xbf16>
    %c0_8 = arith.constant 0 : index
    %c0_9 = arith.constant 0 : index
    %c0_10 = arith.constant 0 : index
    %c0_11 = arith.constant 0 : index
    %9 = vector.load %arg5[%c0_8, %c0_9, %c0_10, %c0_11] : memref<3x4x32x8xbf16, #tpu.memory_space<vmem>>, vector<1x1x32x8xbf16>
    %10 = vector.shape_cast %9 : vector<1x1x32x8xbf16> to vector<32x8xbf16>
    %cst = arith.constant dense<0.000000e+00> : vector<8x8xf32>
    %11 = tpu.matmul %2, %10, %cst {dimension_numbers = #tpu.dot_dimension_numbers<[1], [0], [0], [1], [0, 0, 1, 1], [], []>} : vector<8x32xbf16>, vector<32x8xbf16>, vector<8x8xf32> -> vector<8x8xf32>
    %c0_12 = arith.constant 0 : index
    %c0_13 = arith.constant 0 : index
    %c0_14 = arith.constant 0 : index
    %c0_15 = arith.constant 0 : index
    %12 = vector.load %arg6[%c0_12, %c0_13, %c0_14, %c0_15] : memref<3x4x1x8xf32, #tpu.memory_space<vmem>>, vector<1x1x1x8xf32>
    %13 = vector.shape_cast %12 : vector<1x1x1x8xf32> to vector<1x8xf32>
    %14 = vector.broadcast %13 : vector<1x8xf32> to vector<8x8xf32>
    %15 = arith.addf %11, %14 : vector<8x8xf32>
    %c1 = arith.constant 1 : index
    %c0_16 = arith.constant 0 : index
    %c0_17 = arith.constant 0 : index
    %c0_18 = arith.constant 0 : index
    %16 = vector.load %arg5[%c1, %c0_16, %c0_17, %c0_18] : memref<3x4x32x8xbf16, #tpu.memory_space<vmem>>, vector<1x1x32x8xbf16>
    %17 = vector.shape_cast %16 : vector<1x1x32x8xbf16> to vector<32x8xbf16>
    %cst_19 = arith.constant dense<0.000000e+00> : vector<8x8xf32>
    %18 = tpu.matmul %5, %17, %cst_19 {dimension_numbers = #tpu.dot_dimension_numbers<[1], [0], [0], [1], [0, 0, 1, 1], [], []>} : vector<8x32xbf16>, vector<32x8xbf16>, vector<8x8xf32> -> vector<8x8xf32>
    %c1_20 = arith.constant 1 : index
    %c0_21 = arith.constant 0 : index
    %c0_22 = arith.constant 0 : index
    %c0_23 = arith.constant 0 : index
    %19 = vector.load %arg6[%c1_20, %c0_21, %c0_22, %c0_23] : memref<3x4x1x8xf32, #tpu.memory_space<vmem>>, vector<1x1x1x8xf32>
    %20 = vector.shape_cast %19 : vector<1x1x1x8xf32> to vector<1x8xf32>
    %21 = vector.broadcast %20 : vector<1x8xf32> to vector<8x8xf32>
    %22 = arith.addf %18, %21 : vector<8x8xf32>
    %c2 = arith.constant 2 : index
    %c0_24 = arith.constant 0 : index
    %c0_25 = arith.constant 0 : index
    %c0_26 = arith.constant 0 : index
    %23 = vector.load %arg5[%c2, %c0_24, %c0_25, %c0_26] : memref<3x4x32x8xbf16, #tpu.memory_space<vmem>>, vector<1x1x32x8xbf16>
    %24 = vector.shape_cast %23 : vector<1x1x32x8xbf16> to vector<32x8xbf16>
    %cst_27 = arith.constant dense<0.000000e+00> : vector<8x8xf32>
    %25 = tpu.matmul %8, %24, %cst_27 {dimension_numbers = #tpu.dot_dimension_numbers<[1], [0], [0], [1], [0, 0, 1, 1], [], []>} : vector<8x32xbf16>, vector<32x8xbf16>, vector<8x8xf32> -> vector<8x8xf32>
    %c2_28 = arith.constant 2 : index
    %c0_29 = arith.constant 0 : index
    %c0_30 = arith.constant 0 : index
    %c0_31 = arith.constant 0 : index
    %26 = vector.load %arg6[%c2_28, %c0_29, %c0_30, %c0_31] : memref<3x4x1x8xf32, #tpu.memory_space<vmem>>, vector<1x1x1x8xf32>
    %27 = vector.shape_cast %26 : vector<1x1x1x8xf32> to vector<1x8xf32>
    %28 = vector.broadcast %27 : vector<1x8xf32> to vector<8x8xf32>
    %29 = arith.addf %25, %28 : vector<8x8xf32>
    %cst_32 = arith.constant 0.353553385 : f32
    %30 = vector.broadcast %cst_32 : f32 to vector<8x8xf32>
    %31 = arith.mulf %15, %30 : vector<8x8xf32>
    %32 = arith.truncf %31 : vector<8x8xf32> to vector<8x8xbf16>
    %c0_33 = arith.constant 0 : index
    %c0_34 = arith.constant 0 : index
    %c0_35 = arith.constant 0 : index
    %c0_36 = arith.constant 0 : index
    %33 = vector.load %arg7[%c0_33, %c0_34, %c0_35, %c0_36] : memref<1x4x8x8xbf16, #tpu.memory_space<vmem>>, vector<1x1x8x8xbf16>
    %34 = vector.shape_cast %33 : vector<1x1x8x8xbf16> to vector<8x8xbf16>
    %35 = vector.shape_cast %32 : vector<8x8xbf16> to vector<1x1x8x8xbf16>
    tpu.vector_store %arg7[%c0_33, %c0_34, %c0_35, %c0_36], %35 {strides = array<i32>} : memref<1x4x8x8xbf16, #tpu.memory_space<vmem>>, vector<1x1x8x8xbf16>,
    %36 = arith.truncf %22 : vector<8x8xf32> to vector<8x8xbf16>
    %c0_37 = arith.constant 0 : index
    %c0_38 = arith.constant 0 : index
    %c0_39 = arith.constant 0 : index
    %c0_40 = arith.constant 0 : index
    %37 = vector.load %arg8[%c0_37, %c0_38, %c0_39, %c0_40] : memref<1x4x8x8xbf16, #tpu.memory_space<vmem>>, vector<1x1x8x8xbf16>
    %38 = vector.shape_cast %37 : vector<1x1x8x8xbf16> to vector<8x8xbf16>
    %39 = vector.shape_cast %36 : vector<8x8xbf16> to vector<1x1x8x8xbf16>
    tpu.vector_store %arg8[%c0_37, %c0_38, %c0_39, %c0_40], %39 {strides = array<i32>} : memref<1x4x8x8xbf16, #tpu.memory_space<vmem>>, vector<1x1x8x8xbf16>,
    %40 = arith.truncf %29 : vector<8x8xf32> to vector<8x8xbf16>
    %c0_41 = arith.constant 0 : index
    %c0_42 = arith.constant 0 : index
    %c0_43 = arith.constant 0 : index
    %c0_44 = arith.constant 0 : index
    %41 = vector.load %arg9[%c0_41, %c0_42, %c0_43, %c0_44] : memref<1x4x8x8xbf16, #tpu.memory_space<vmem>>, vector<1x1x8x8xbf16>
    %42 = vector.shape_cast %41 : vector<1x1x8x8xbf16> to vector<8x8xbf16>
    %43 = vector.shape_cast %40 : vector<8x8xbf16> to vector<1x1x8x8xbf16>
    tpu.vector_store %arg9[%c0_41, %c0_42, %c0_43, %c0_44], %43 {strides = array<i32>} : memref<1x4x8x8xbf16, #tpu.memory_space<vmem>>, vector<1x1x8x8xbf16>,
    %c0_45 = arith.constant 0 : index
    %c1_46 = arith.constant 1 : index
    %c0_47 = arith.constant 0 : index
    %c0_48 = arith.constant 0 : index
    %44 = vector.load %arg5[%c0_45, %c1_46, %c0_47, %c0_48] : memref<3x4x32x8xbf16, #tpu.memory_space<vmem>>, vector<1x1x32x8xbf16>
    %45 = vector.shape_cast %44 : vector<1x1x32x8xbf16> to vector<32x8xbf16>
    %cst_49 = arith.constant dense<0.000000e+00> : vector<8x8xf32>
    %46 = tpu.matmul %2, %45, %cst_49 {dimension_numbers = #tpu.dot_dimension_numbers<[1], [0], [0], [1], [0, 0, 1, 1], [], []>} : vector<8x32xbf16>, vector<32x8xbf16>, vector<8x8xf32> -> vector<8x8xf32>
    %c0_50 = arith.constant 0 : index
    %c1_51 = arith.constant 1 : index
    %c0_52 = arith.constant 0 : index
    %c0_53 = arith.constant 0 : index
    %47 = vector.load %arg6[%c0_50, %c1_51, %c0_52, %c0_53] : memref<3x4x1x8xf32, #tpu.memory_space<vmem>>, vector<1x1x1x8xf32>
    %48 = vector.shape_cast %47 : vector<1x1x1x8xf32> to vector<1x8xf32>
    %49 = vector.broadcast %48 : vector<1x8xf32> to vector<8x8xf32>
    %50 = arith.addf %46, %49 : vector<8x8xf32>
    %c1_54 = arith.constant 1 : index
    %c1_55 = arith.constant 1 : index
    %c0_56 = arith.constant 0 : index
    %c0_57 = arith.constant 0 : index
    %51 = vector.load %arg5[%c1_54, %c1_55, %c0_56, %c0_57] : memref<3x4x32x8xbf16, #tpu.memory_space<vmem>>, vector<1x1x32x8xbf16>
    %52 = vector.shape_cast %51 : vector<1x1x32x8xbf16> to vector<32x8xbf16>
    %cst_58 = arith.constant dense<0.000000e+00> : vector<8x8xf32>
    %53 = tpu.matmul %5, %52, %cst_58 {dimension_numbers = #tpu.dot_dimension_numbers<[1], [0], [0], [1], [0, 0, 1, 1], [], []>} : vector<8x32xbf16>, vector<32x8xbf16>, vector<8x8xf32> -> vector<8x8xf32>
    %c1_59 = arith.constant 1 : index
    %c1_60 = arith.constant 1 : index
    %c0_61 = arith.constant 0 : index
    %c0_62 = arith.constant 0 : index
    %54 = vector.load %arg6[%c1_59, %c1_60, %c0_61, %c0_62] : memref<3x4x1x8xf32, #tpu.memory_space<vmem>>, vector<1x1x1x8xf32>
    %55 = vector.shape_cast %54 : vector<1x1x1x8xf32> to vector<1x8xf32>
    %56 = vector.broadcast %55 : vector<1x8xf32> to vector<8x8xf32>
    %57 = arith.addf %53, %56 : vector<8x8xf32>
    %c2_63 = arith.constant 2 : index
    %c1_64 = arith.constant 1 : index
    %c0_65 = arith.constant 0 : index
    %c0_66 = arith.constant 0 : index
    %58 = vector.load %arg5[%c2_63, %c1_64, %c0_65, %c0_66] : memref<3x4x32x8xbf16, #tpu.memory_space<vmem>>, vector<1x1x32x8xbf16>
    %59 = vector.shape_cast %58 : vector<1x1x32x8xbf16> to vector<32x8xbf16>
    %cst_67 = arith.constant dense<0.000000e+00> : vector<8x8xf32>
    %60 = tpu.matmul %8, %59, %cst_67 {dimension_numbers = #tpu.dot_dimension_numbers<[1], [0], [0], [1], [0, 0, 1, 1], [], []>} : vector<8x32xbf16>, vector<32x8xbf16>, vector<8x8xf32> -> vector<8x8xf32>
    %c2_68 = arith.constant 2 : index
    %c1_69 = arith.constant 1 : index
    %c0_70 = arith.constant 0 : index
    %c0_71 = arith.constant 0 : index
    %61 = vector.load %arg6[%c2_68, %c1_69, %c0_70, %c0_71] : memref<3x4x1x8xf32, #tpu.memory_space<vmem>>, vector<1x1x1x8xf32>
    %62 = vector.shape_cast %61 : vector<1x1x1x8xf32> to vector<1x8xf32>
    %63 = vector.broadcast %62 : vector<1x8xf32> to vector<8x8xf32>
    %64 = arith.addf %60, %63 : vector<8x8xf32>
    %cst_72 = arith.constant 0.353553385 : f32
    %65 = vector.broadcast %cst_72 : f32 to vector<8x8xf32>
    %66 = arith.mulf %50, %65 : vector<8x8xf32>
    %67 = arith.truncf %66 : vector<8x8xf32> to vector<8x8xbf16>
    %c0_73 = arith.constant 0 : index
    %c1_74 = arith.constant 1 : index
    %c0_75 = arith.constant 0 : index
    %c0_76 = arith.constant 0 : index
    %68 = vector.load %arg7[%c0_73, %c1_74, %c0_75, %c0_76] : memref<1x4x8x8xbf16, #tpu.memory_space<vmem>>, vector<1x1x8x8xbf16>
    %69 = vector.shape_cast %68 : vector<1x1x8x8xbf16> to vector<8x8xbf16>
    %70 = vector.shape_cast %67 : vector<8x8xbf16> to vector<1x1x8x8xbf16>
    tpu.vector_store %arg7[%c0_73, %c1_74, %c0_75, %c0_76], %70 {strides = array<i32>} : memref<1x4x8x8xbf16, #tpu.memory_space<vmem>>, vector<1x1x8x8xbf16>,
    %71 = arith.truncf %57 : vector<8x8xf32> to vector<8x8xbf16>
    %c0_77 = arith.constant 0 : index
    %c1_78 = arith.constant 1 : index
    %c0_79 = arith.constant 0 : index
    %c0_80 = arith.constant 0 : index
    %72 = vector.load %arg8[%c0_77, %c1_78, %c0_79, %c0_80] : memref<1x4x8x8xbf16, #tpu.memory_space<vmem>>, vector<1x1x8x8xbf16>
    %73 = vector.shape_cast %72 : vector<1x1x8x8xbf16> to vector<8x8xbf16>
    %74 = vector.shape_cast %71 : vector<8x8xbf16> to vector<1x1x8x8xbf16>
    tpu.vector_store %arg8[%c0_77, %c1_78, %c0_79, %c0_80], %74 {strides = array<i32>} : memref<1x4x8x8xbf16, #tpu.memory_space<vmem>>, vector<1x1x8x8xbf16>,
    %75 = arith.truncf %64 : vector<8x8xf32> to vector<8x8xbf16>
    %c0_81 = arith.constant 0 : index
    %c1_82 = arith.constant 1 : index
    %c0_83 = arith.constant 0 : index
    %c0_84 = arith.constant 0 : index
    %76 = vector.load %arg9[%c0_81, %c1_82, %c0_83, %c0_84] : memref<1x4x8x8xbf16, #tpu.memory_space<vmem>>, vector<1x1x8x8xbf16>
    %77 = vector.shape_cast %76 : vector<1x1x8x8xbf16> to vector<8x8xbf16>
    %78 = vector.shape_cast %75 : vector<8x8xbf16> to vector<1x1x8x8xbf16>
    tpu.vector_store %arg9[%c0_81, %c1_82, %c0_83, %c0_84], %78 {strides = array<i32>} : memref<1x4x8x8xbf16, #tpu.memory_space<vmem>>, vector<1x1x8x8xbf16>,
    %c0_85 = arith.constant 0 : index
    %c2_86 = arith.constant 2 : index
    %c0_87 = arith.constant 0 : index
    %c0_88 = arith.constant 0 : index
    %79 = vector.load %arg5[%c0_85, %c2_86, %c0_87, %c0_88] : memref<3x4x32x8xbf16, #tpu.memory_space<vmem>>, vector<1x1x32x8xbf16>
    %80 = vector.shape_cast %79 : vector<1x1x32x8xbf16> to vector<32x8xbf16>
    %cst_89 = arith.constant dense<0.000000e+00> : vector<8x8xf32>
    %81 = tpu.matmul %2, %80, %cst_89 {dimension_numbers = #tpu.dot_dimension_numbers<[1], [0], [0], [1], [0, 0, 1, 1], [], []>} : vector<8x32xbf16>, vector<32x8xbf16>, vector<8x8xf32> -> vector<8x8xf32>
    %c0_90 = arith.constant 0 : index
    %c2_91 = arith.constant 2 : index
    %c0_92 = arith.constant 0 : index
    %c0_93 = arith.constant 0 : index
    %82 = vector.load %arg6[%c0_90, %c2_91, %c0_92, %c0_93] : memref<3x4x1x8xf32, #tpu.memory_space<vmem>>, vector<1x1x1x8xf32>
    %83 = vector.shape_cast %82 : vector<1x1x1x8xf32> to vector<1x8xf32>
    %84 = vector.broadcast %83 : vector<1x8xf32> to vector<8x8xf32>
    %85 = arith.addf %81, %84 : vector<8x8xf32>
    %c1_94 = arith.constant 1 : index
    %c2_95 = arith.constant 2 : index
    %c0_96 = arith.constant 0 : index
    %c0_97 = arith.constant 0 : index
    %86 = vector.load %arg5[%c1_94, %c2_95, %c0_96, %c0_97] : memref<3x4x32x8xbf16, #tpu.memory_space<vmem>>, vector<1x1x32x8xbf16>
    %87 = vector.shape_cast %86 : vector<1x1x32x8xbf16> to vector<32x8xbf16>
    %cst_98 = arith.constant dense<0.000000e+00> : vector<8x8xf32>
    %88 = tpu.matmul %5, %87, %cst_98 {dimension_numbers = #tpu.dot_dimension_numbers<[1], [0], [0], [1], [0, 0, 1, 1], [], []>} : vector<8x32xbf16>, vector<32x8xbf16>, vector<8x8xf32> -> vector<8x8xf32>
    %c1_99 = arith.constant 1 : index
    %c2_100 = arith.constant 2 : index
    %c0_101 = arith.constant 0 : index
    %c0_102 = arith.constant 0 : index
    %89 = vector.load %arg6[%c1_99, %c2_100, %c0_101, %c0_102] : memref<3x4x1x8xf32, #tpu.memory_space<vmem>>, vector<1x1x1x8xf32>
    %90 = vector.shape_cast %89 : vector<1x1x1x8xf32> to vector<1x8xf32>
    %91 = vector.broadcast %90 : vector<1x8xf32> to vector<8x8xf32>
    %92 = arith.addf %88, %91 : vector<8x8xf32>
    %c2_103 = arith.constant 2 : index
    %c2_104 = arith.constant 2 : index
    %c0_105 = arith.constant 0 : index
    %c0_106 = arith.constant 0 : index
    %93 = vector.load %arg5[%c2_103, %c2_104, %c0_105, %c0_106] : memref<3x4x32x8xbf16, #tpu.memory_space<vmem>>, vector<1x1x32x8xbf16>
    %94 = vector.shape_cast %93 : vector<1x1x32x8xbf16> to vector<32x8xbf16>
    %cst_107 = arith.constant dense<0.000000e+00> : vector<8x8xf32>
    %95 = tpu.matmul %8, %94, %cst_107 {dimension_numbers = #tpu.dot_dimension_numbers<[1], [0], [0], [1], [0, 0, 1, 1], [], []>} : vector<8x32xbf16>, vector<32x8xbf16>, vector<8x8xf32> -> vector<8x8xf32>
    %c2_108 = arith.constant 2 : index
    %c2_109 = arith.constant 2 : index
    %c0_110 = arith.constant 0 : index
    %c0_111 = arith.constant 0 : index
    %96 = vector.load %arg6[%c2_108, %c2_109, %c0_110, %c0_111] : memref<3x4x1x8xf32, #tpu.memory_space<vmem>>, vector<1x1x1x8xf32>
    %97 = vector.shape_cast %96 : vector<1x1x1x8xf32> to vector<1x8xf32>
    %98 = vector.broadcast %97 : vector<1x8xf32> to vector<8x8xf32>
    %99 = arith.addf %95, %98 : vector<8x8xf32>
    %cst_112 = arith.constant 0.353553385 : f32
    %100 = vector.broadcast %cst_112 : f32 to vector<8x8xf32>
    %101 = arith.mulf %85, %100 : vector<8x8xf32>
    %102 = arith.truncf %101 : vector<8x8xf32> to vector<8x8xbf16>
    %c0_113 = arith.constant 0 : index
    %c2_114 = arith.constant 2 : index
    %c0_115 = arith.constant 0 : index
    %c0_116 = arith.constant 0 : index
    %103 = vector.load %arg7[%c0_113, %c2_114, %c0_115, %c0_116] : memref<1x4x8x8xbf16, #tpu.memory_space<vmem>>, vector<1x1x8x8xbf16>
    %104 = vector.shape_cast %103 : vector<1x1x8x8xbf16> to vector<8x8xbf16>
    %105 = vector.shape_cast %102 : vector<8x8xbf16> to vector<1x1x8x8xbf16>
    tpu.vector_store %arg7[%c0_113, %c2_114, %c0_115, %c0_116], %105 {strides = array<i32>} : memref<1x4x8x8xbf16, #tpu.memory_space<vmem>>, vector<1x1x8x8xbf16>,
    %106 = arith.truncf %92 : vector<8x8xf32> to vector<8x8xbf16>
    %c0_117 = arith.constant 0 : index
    %c2_118 = arith.constant 2 : index
    %c0_119 = arith.constant 0 : index
    %c0_120 = arith.constant 0 : index
    %107 = vector.load %arg8[%c0_117, %c2_118, %c0_119, %c0_120] : memref<1x4x8x8xbf16, #tpu.memory_space<vmem>>, vector<1x1x8x8xbf16>
    %108 = vector.shape_cast %107 : vector<1x1x8x8xbf16> to vector<8x8xbf16>
    %109 = vector.shape_cast %106 : vector<8x8xbf16> to vector<1x1x8x8xbf16>
    tpu.vector_store %arg8[%c0_117, %c2_118, %c0_119, %c0_120], %109 {strides = array<i32>} : memref<1x4x8x8xbf16, #tpu.memory_space<vmem>>, vector<1x1x8x8xbf16>,
    %110 = arith.truncf %99 : vector<8x8xf32> to vector<8x8xbf16>
    %c0_121 = arith.constant 0 : index
    %c2_122 = arith.constant 2 : index
    %c0_123 = arith.constant 0 : index
    %c0_124 = arith.constant 0 : index
    %111 = vector.load %arg9[%c0_121, %c2_122, %c0_123, %c0_124] : memref<1x4x8x8xbf16, #tpu.memory_space<vmem>>, vector<1x1x8x8xbf16>
    %112 = vector.shape_cast %111 : vector<1x1x8x8xbf16> to vector<8x8xbf16>
    %113 = vector.shape_cast %110 : vector<8x8xbf16> to vector<1x1x8x8xbf16>
    tpu.vector_store %arg9[%c0_121, %c2_122, %c0_123, %c0_124], %113 {strides = array<i32>} : memref<1x4x8x8xbf16, #tpu.memory_space<vmem>>, vector<1x1x8x8xbf16>,
    %c0_125 = arith.constant 0 : index
    %c3 = arith.constant 3 : index
    %c0_126 = arith.constant 0 : index
    %c0_127 = arith.constant 0 : index
    %114 = vector.load %arg5[%c0_125, %c3, %c0_126, %c0_127] : memref<3x4x32x8xbf16, #tpu.memory_space<vmem>>, vector<1x1x32x8xbf16>
    %115 = vector.shape_cast %114 : vector<1x1x32x8xbf16> to vector<32x8xbf16>
    %cst_128 = arith.constant dense<0.000000e+00> : vector<8x8xf32>
    %116 = tpu.matmul %2, %115, %cst_128 {dimension_numbers = #tpu.dot_dimension_numbers<[1], [0], [0], [1], [0, 0, 1, 1], [], []>} : vector<8x32xbf16>, vector<32x8xbf16>, vector<8x8xf32> -> vector<8x8xf32>
    %c0_129 = arith.constant 0 : index
    %c3_130 = arith.constant 3 : index
    %c0_131 = arith.constant 0 : index
    %c0_132 = arith.constant 0 : index
    %117 = vector.load %arg6[%c0_129, %c3_130, %c0_131, %c0_132] : memref<3x4x1x8xf32, #tpu.memory_space<vmem>>, vector<1x1x1x8xf32>
    %118 = vector.shape_cast %117 : vector<1x1x1x8xf32> to vector<1x8xf32>
    %119 = vector.broadcast %118 : vector<1x8xf32> to vector<8x8xf32>
    %120 = arith.addf %116, %119 : vector<8x8xf32>
    %c1_133 = arith.constant 1 : index
    %c3_134 = arith.constant 3 : index
    %c0_135 = arith.constant 0 : index
    %c0_136 = arith.constant 0 : index
    %121 = vector.load %arg5[%c1_133, %c3_134, %c0_135, %c0_136] : memref<3x4x32x8xbf16, #tpu.memory_space<vmem>>, vector<1x1x32x8xbf16>
    %122 = vector.shape_cast %121 : vector<1x1x32x8xbf16> to vector<32x8xbf16>
    %cst_137 = arith.constant dense<0.000000e+00> : vector<8x8xf32>
    %123 = tpu.matmul %5, %122, %cst_137 {dimension_numbers = #tpu.dot_dimension_numbers<[1], [0], [0], [1], [0, 0, 1, 1], [], []>} : vector<8x32xbf16>, vector<32x8xbf16>, vector<8x8xf32> -> vector<8x8xf32>
    %c1_138 = arith.constant 1 : index
    %c3_139 = arith.constant 3 : index
    %c0_140 = arith.constant 0 : index
    %c0_141 = arith.constant 0 : index
    %124 = vector.load %arg6[%c1_138, %c3_139, %c0_140, %c0_141] : memref<3x4x1x8xf32, #tpu.memory_space<vmem>>, vector<1x1x1x8xf32>
    %125 = vector.shape_cast %124 : vector<1x1x1x8xf32> to vector<1x8xf32>
    %126 = vector.broadcast %125 : vector<1x8xf32> to vector<8x8xf32>
    %127 = arith.addf %123, %126 : vector<8x8xf32>
    %c2_142 = arith.constant 2 : index
    %c3_143 = arith.constant 3 : index
    %c0_144 = arith.constant 0 : index
    %c0_145 = arith.constant 0 : index
    %128 = vector.load %arg5[%c2_142, %c3_143, %c0_144, %c0_145] : memref<3x4x32x8xbf16, #tpu.memory_space<vmem>>, vector<1x1x32x8xbf16>
    %129 = vector.shape_cast %128 : vector<1x1x32x8xbf16> to vector<32x8xbf16>
    %cst_146 = arith.constant dense<0.000000e+00> : vector<8x8xf32>
    %130 = tpu.matmul %8, %129, %cst_146 {dimension_numbers = #tpu.dot_dimension_numbers<[1], [0], [0], [1], [0, 0, 1, 1], [], []>} : vector<8x32xbf16>, vector<32x8xbf16>, vector<8x8xf32> -> vector<8x8xf32>
    %c2_147 = arith.constant 2 : index
    %c3_148 = arith.constant 3 : index
    %c0_149 = arith.constant 0 : index
    %c0_150 = arith.constant 0 : index
    %131 = vector.load %arg6[%c2_147, %c3_148, %c0_149, %c0_150] : memref<3x4x1x8xf32, #tpu.memory_space<vmem>>, vector<1x1x1x8xf32>
    %132 = vector.shape_cast %131 : vector<1x1x1x8xf32> to vector<1x8xf32>
    %133 = vector.broadcast %132 : vector<1x8xf32> to vector<8x8xf32>
    %134 = arith.addf %130, %133 : vector<8x8xf32>
    %cst_151 = arith.constant 0.353553385 : f32
    %135 = vector.broadcast %cst_151 : f32 to vector<8x8xf32>
    %136 = arith.mulf %120, %135 : vector<8x8xf32>
    %137 = arith.truncf %136 : vector<8x8xf32> to vector<8x8xbf16>
    %c0_152 = arith.constant 0 : index
    %c3_153 = arith.constant 3 : index
    %c0_154 = arith.constant 0 : index
    %c0_155 = arith.constant 0 : index
    %138 = vector.load %arg7[%c0_152, %c3_153, %c0_154, %c0_155] : memref<1x4x8x8xbf16, #tpu.memory_space<vmem>>, vector<1x1x8x8xbf16>
    %139 = vector.shape_cast %138 : vector<1x1x8x8xbf16> to vector<8x8xbf16>
    %140 = vector.shape_cast %137 : vector<8x8xbf16> to vector<1x1x8x8xbf16>
    tpu.vector_store %arg7[%c0_152, %c3_153, %c0_154, %c0_155], %140 {strides = array<i32>} : memref<1x4x8x8xbf16, #tpu.memory_space<vmem>>, vector<1x1x8x8xbf16>,
    %141 = arith.truncf %127 : vector<8x8xf32> to vector<8x8xbf16>
    %c0_156 = arith.constant 0 : index
    %c3_157 = arith.constant 3 : index
    %c0_158 = arith.constant 0 : index
    %c0_159 = arith.constant 0 : index
    %142 = vector.load %arg8[%c0_156, %c3_157, %c0_158, %c0_159] : memref<1x4x8x8xbf16, #tpu.memory_space<vmem>>, vector<1x1x8x8xbf16>
    %143 = vector.shape_cast %142 : vector<1x1x8x8xbf16> to vector<8x8xbf16>
    %144 = vector.shape_cast %141 : vector<8x8xbf16> to vector<1x1x8x8xbf16>
    tpu.vector_store %arg8[%c0_156, %c3_157, %c0_158, %c0_159], %144 {strides = array<i32>} : memref<1x4x8x8xbf16, #tpu.memory_space<vmem>>, vector<1x1x8x8xbf16>,
    %145 = arith.truncf %134 : vector<8x8xf32> to vector<8x8xbf16>
    %c0_160 = arith.constant 0 : index
    %c3_161 = arith.constant 3 : index
    %c0_162 = arith.constant 0 : index
    %c0_163 = arith.constant 0 : index
    %146 = vector.load %arg9[%c0_160, %c3_161, %c0_162, %c0_163] : memref<1x4x8x8xbf16, #tpu.memory_space<vmem>>, vector<1x1x8x8xbf16>
    %147 = vector.shape_cast %146 : vector<1x1x8x8xbf16> to vector<8x8xbf16>
    %148 = vector.shape_cast %145 : vector<8x8xbf16> to vector<1x1x8x8xbf16>
    tpu.vector_store %arg9[%c0_160, %c3_161, %c0_162, %c0_163], %148 {strides = array<i32>} : memref<1x4x8x8xbf16, #tpu.memory_space<vmem>>, vector<1x1x8x8xbf16>,
    return
  }
  func.func @transform_0(%arg0: i32, %arg1: i32) -> (i32, i32, i32) {
    %c0_i32 = arith.constant 0 : i32
    %c0_i32_0 = arith.constant 0 : i32
    return %arg0, %arg1, %c0_i32 : i32, i32, i32
  }
  func.func @transform_1(%arg0: i32, %arg1: i32) -> (i32, i32, i32) {
    %c0_i32 = arith.constant 0 : i32
    %c0_i32_0 = arith.constant 0 : i32
    return %arg0, %arg1, %c0_i32 : i32, i32, i32
  }
  func.func @transform_2(%arg0: i32, %arg1: i32) -> (i32, i32, i32) {
    %c0_i32 = arith.constant 0 : i32
    %c0_i32_0 = arith.constant 0 : i32
    return %arg0, %arg1, %c0_i32 : i32, i32, i32
  }
  func.func @transform_3(%arg0: i32, %arg1: i32) -> (i32, i32, i32, i32) {
    %c0_i32 = arith.constant 0 : i32
    %c0_i32_0 = arith.constant 0 : i32
    %c0_i32_1 = arith.constant 0 : i32
    %c0_i32_2 = arith.constant 0 : i32
    %c0_i32_3 = arith.constant 0 : i32
    return %c0_i32, %c0_i32_0, %c0_i32_1, %c0_i32_2 : i32, i32, i32, i32
  }
  func.func @transform_4(%arg0: i32, %arg1: i32) -> (i32, i32, i32, i32) {
    %c0_i32 = arith.constant 0 : i32
    %c0_i32_0 = arith.constant 0 : i32
    %c0_i32_1 = arith.constant 0 : i32
    %c0_i32_2 = arith.constant 0 : i32
    %c0_i32_3 = arith.constant 0 : i32
    return %c0_i32, %c0_i32_0, %c0_i32_1, %c0_i32_2 : i32, i32, i32, i32
  }
  func.func @transform_5(%arg0: i32, %arg1: i32) -> (i32, i32, i32, i32) {
    %c0_i32 = arith.constant 0 : i32
    %c0_i32_0 = arith.constant 0 : i32
    %c0_i32_1 = arith.constant 0 : i32
    return %arg0, %c0_i32, %arg1, %c0_i32_0 : i32, i32, i32, i32
  }
  func.func @transform_6(%arg0: i32, %arg1: i32) -> (i32, i32, i32, i32) {
    %c0_i32 = arith.constant 0 : i32
    %c0_i32_0 = arith.constant 0 : i32
    %c0_i32_1 = arith.constant 0 : i32
    return %arg0, %c0_i32, %arg1, %c0_i32_0 : i32, i32, i32, i32
  }
  func.func @transform_7(%arg0: i32, %arg1: i32) -> (i32, i32, i32, i32) {
    %c0_i32 = arith.constant 0 : i32
    %c0_i32_0 = arith.constant 0 : i32
    %c0_i32_1 = arith.constant 0 : i32
    return %arg0, %c0_i32, %arg1, %c0_i32_0 : i32, i32, i32, i32
  }
}

module attributes {stable_mosaic.version = 11 : i64} {
  func.func @qkv_projection_kernel(%arg0: i32, %arg1: i32, %arg2: memref<1x8x32xf32, #tpu.memory_space<vmem>>, %arg3: memref<1x8x32xf32, #tpu.memory_space<vmem>>, %arg4: memref<1x8x32xf32, #tpu.memory_space<vmem>>, %arg5: memref<3x4x32x8xbf16, #tpu.memory_space<vmem>>, %arg6: memref<3x4x1x8xf32, #tpu.memory_space<vmem>>, %arg7: memref<1x4x8x8xbf16, #tpu.memory_space<vmem>>, %arg8: memref<1x4x8x8xbf16, #tpu.memory_space<vmem>>, %arg9: memref<1x4x8x8xbf16, #tpu.memory_space<vmem>>) attributes {dimension_semantics = [#tpu.dimension_semantics<parallel>, #tpu.dimension_semantics<parallel>], iteration_bounds = array<i64: 2, 1>, scalar_prefetch = 0 : i64, scratch_operands = 0 : i64, tpu.core_type = #tpu.core_type<tc>, window_params = [{transform_indices = @transform_0, window_bounds = array<i64: 1, 8, 32>}, {transform_indices = @transform_1, window_bounds = array<i64: 1, 8, 32>}, {transform_indices = @transform_2, window_bounds = array<i64: 1, 8, 32>}, {pipeline_mode = #tpu.pipeline_mode<synchronous>, transform_indices = @transform_3, window_bounds = array<i64: 3, 4, 32, 8>}, {pipeline_mode = #tpu.pipeline_mode<synchronous>, transform_indices = @transform_4, window_bounds = array<i64: 3, 4, 1, 8>}, {transform_indices = @transform_5, window_bounds = array<i64: 1, 4, 8, 8>}, {transform_indices = @transform_6, window_bounds = array<i64: 1, 4, 8, 8>}, {transform_indices = @transform_7, window_bounds = array<i64: 1, 4, 8, 8>}]} {
    %c0 = arith.constant 0 : index
    %c0_0 = arith.constant 0 : index
    %c0_1 = arith.constant 0 : index
    %0 = vector.load %arg2[%c0, %c0_0, %c0_1] : memref<1x8x32xf32, #tpu.memory_space<vmem>>, vector<1x8x32xf32>
    %1 = vector.shape_cast %0 : vector<1x8x32xf32> to vector<8x32xf32>
    %2 = arith.truncf %1 : vector<8x32xf32> to vector<8x32xbf16>
    %c0_2 = arith.constant 0 : index
    %c0_3 = arith.constant 0 : index
    %c0_4 = arith.constant 0 : index
    %3 = vector.load %arg3[%c0_2, %c0_3, %c0_4] : memref<1x8x32xf32, #tpu.memory_space<vmem>>, vector<1x8x32xf32>
    %4 = vector.shape_cast %3 : vector<1x8x32xf32> to vector<8x32xf32>
    %5 = arith.truncf %4 : vector<8x32xf32> to vector<8x32xbf16>
    %c0_5 = arith.constant 0 : index
    %c0_6 = arith.constant 0 : index
    %c0_7 = arith.constant 0 : index
    %6 = vector.load %arg4[%c0_5, %c0_6, %c0_7] : memref<1x8x32xf32, #tpu.memory_space<vmem>>, vector<1x8x32xf32>
    %7 = vector.shape_cast %6 : vector<1x8x32xf32> to vector<8x32xf32>
    %8 = arith.truncf %7 : vector<8x32xf32> to vector<8x32xbf16>
    %c0_8 = arith.constant 0 : index
    %c0_9 = arith.constant 0 : index
    %c0_10 = arith.constant 0 : index
    %c0_11 = arith.constant 0 : index
    %9 = vector.load %arg5[%c0_8, %c0_9, %c0_10, %c0_11] : memref<3x4x32x8xbf16, #tpu.memory_space<vmem>>, vector<1x1x32x8xbf16>
    %10 = vector.shape_cast %9 : vector<1x1x32x8xbf16> to vector<32x8xbf16>
    %cst = arith.constant dense<0.000000e+00> : vector<8x8xf32>
    %11 = tpu.matmul %2, %10, %cst {dimension_numbers = #tpu.dot_dimension_numbers<[1], [0], [0], [1], [0, 0, 1, 1], [], []>} : vector<8x32xbf16>, vector<32x8xbf16>, vector<8x8xf32> -> vector<8x8xf32>
    %c0_12 = arith.constant 0 : index
    %c0_13 = arith.constant 0 : index
    %c0_14 = arith.constant 0 : index
    %c0_15 = arith.constant 0 : index
    %12 = vector.load %arg6[%c0_12, %c0_13, %c0_14, %c0_15] : memref<3x4x1x8xf32, #tpu.memory_space<vmem>>, vector<1x1x1x8xf32>
    %13 = vector.shape_cast %12 : vector<1x1x1x8xf32> to vector<1x8xf32>
    %14 = vector.broadcast %13 : vector<1x8xf32> to vector<8x8xf32>
    %15 = arith.addf %11, %14 : vector<8x8xf32>
    %c1 = arith.constant 1 : index
    %c0_16 = arith.constant 0 : index
    %c0_17 = arith.constant 0 : index
    %c0_18 = arith.constant 0 : index
    %16 = vector.load %arg5[%c1, %c0_16, %c0_17, %c0_18] : memref<3x4x32x8xbf16, #tpu.memory_space<vmem>>, vector<1x1x32x8xbf16>
    %17 = vector.shape_cast %16 : vector<1x1x32x8xbf16> to vector<32x8xbf16>
    %cst_19 = arith.constant dense<0.000000e+00> : vector<8x8xf32>
    %18 = tpu.matmul %5, %17, %cst_19 {dimension_numbers = #tpu.dot_dimension_numbers<[1], [0], [0], [1], [0, 0, 1, 1], [], []>} : vector<8x32xbf16>, vector<32x8xbf16>, vector<8x8xf32> -> vector<8x8xf32>
    %c1_20 = arith.constant 1 : index
    %c0_21 = arith.constant 0 : index
    %c0_22 = arith.constant 0 : index
    %c0_23 = arith.constant 0 : index
    %19 = vector.load %arg6[%c1_20, %c0_21, %c0_22, %c0_23] : memref<3x4x1x8xf32, #tpu.memory_space<vmem>>, vector<1x1x1x8xf32>
    %20 = vector.shape_cast %19 : vector<1x1x1x8xf32> to vector<1x8xf32>
    %21 = vector.broadcast %20 : vector<1x8xf32> to vector<8x8xf32>
    %22 = arith.addf %18, %21 : vector<8x8xf32>
    %c2 = arith.constant 2 : index
    %c0_24 = arith.constant 0 : index
    %c0_25 = arith.constant 0 : index
    %c0_26 = arith.constant 0 : index
    %23 = vector.load %arg5[%c2, %c0_24, %c0_25, %c0_26] : memref<3x4x32x8xbf16, #tpu.memory_space<vmem>>, vector<1x1x32x8xbf16>
    %24 = vector.shape_cast %23 : vector<1x1x32x8xbf16> to vector<32x8xbf16>
    %cst_27 = arith.constant dense<0.000000e+00> : vector<8x8xf32>
    %25 = tpu.matmul %8, %24, %cst_27 {dimension_numbers = #tpu.dot_dimension_numbers<[1], [0], [0], [1], [0, 0, 1, 1], [], []>} : vector<8x32xbf16>, vector<32x8xbf16>, vector<8x8xf32> -> vector<8x8xf32>
    %c2_28 = arith.constant 2 : index
    %c0_29 = arith.constant 0 : index
    %c0_30 = arith.constant 0 : index
    %c0_31 = arith.constant 0 : index
    %26 = vector.load %arg6[%c2_28, %c0_29, %c0_30, %c0_31] : memref<3x4x1x8xf32, #tpu.memory_space<vmem>>, vector<1x1x1x8xf32>
    %27 = vector.shape_cast %26 : vector<1x1x1x8xf32> to vector<1x8xf32>
    %28 = vector.broadcast %27 : vector<1x8xf32> to vector<8x8xf32>
    %29 = arith.addf %25, %28 : vector<8x8xf32>
    %cst_32 = arith.constant 0.353553385 : f32
    %30 = vector.broadcast %cst_32 : f32 to vector<8x8xf32>
    %31 = arith.mulf %15, %30 : vector<8x8xf32>
    %32 = arith.truncf %31 : vector<8x8xf32> to vector<8x8xbf16>
    %c0_33 = arith.constant 0 : index
    %c0_34 = arith.constant 0 : index
    %c0_35 = arith.constant 0 : index
    %c0_36 = arith.constant 0 : index
    %33 = vector.load %arg7[%c0_33, %c0_34, %c0_35, %c0_36] : memref<1x4x8x8xbf16, #tpu.memory_space<vmem>>, vector<1x1x8x8xbf16>
    %34 = vector.shape_cast %33 : vector<1x1x8x8xbf16> to vector<8x8xbf16>
    %35 = vector.shape_cast %32 : vector<8x8xbf16> to vector<1x1x8x8xbf16>
    tpu.vector_store %arg7[%c0_33, %c0_34, %c0_35, %c0_36], %35 {strides = array<i32>} : memref<1x4x8x8xbf16, #tpu.memory_space<vmem>>, vector<1x1x8x8xbf16>,
    %36 = arith.truncf %22 : vector<8x8xf32> to vector<8x8xbf16>
    %c0_37 = arith.constant 0 : index
    %c0_38 = arith.constant 0 : index
    %c0_39 = arith.constant 0 : index
    %c0_40 = arith.constant 0 : index
    %37 = vector.load %arg8[%c0_37, %c0_38, %c0_39, %c0_40] : memref<1x4x8x8xbf16, #tpu.memory_space<vmem>>, vector<1x1x8x8xbf16>
    %38 = vector.shape_cast %37 : vector<1x1x8x8xbf16> to vector<8x8xbf16>
    %39 = vector.shape_cast %36 : vector<8x8xbf16> to vector<1x1x8x8xbf16>
    tpu.vector_store %arg8[%c0_37, %c0_38, %c0_39, %c0_40], %39 {strides = array<i32>} : memref<1x4x8x8xbf16, #tpu.memory_space<vmem>>, vector<1x1x8x8xbf16>,
    %40 = arith.truncf %29 : vector<8x8xf32> to vector<8x8xbf16>
    %c0_41 = arith.constant 0 : index
    %c0_42 = arith.constant 0 : index
    %c0_43 = arith.constant 0 : index
    %c0_44 = arith.constant 0 : index
    %41 = vector.load %arg9[%c0_41, %c0_42, %c0_43, %c0_44] : memref<1x4x8x8xbf16, #tpu.memory_space<vmem>>, vector<1x1x8x8xbf16>
    %42 = vector.shape_cast %41 : vector<1x1x8x8xbf16> to vector<8x8xbf16>
    %43 = vector.shape_cast %40 : vector<8x8xbf16> to vector<1x1x8x8xbf16>
    tpu.vector_store %arg9[%c0_41, %c0_42, %c0_43, %c0_44], %43 {strides = array<i32>} : memref<1x4x8x8xbf16, #tpu.memory_space<vmem>>, vector<1x1x8x8xbf16>,
    %c0_45 = arith.constant 0 : index
    %c1_46 = arith.constant 1 : index
    %c0_47 = arith.constant 0 : index
    %c0_48 = arith.constant 0 : index
    %44 = vector.load %arg5[%c0_45, %c1_46, %c0_47, %c0_48] : memref<3x4x32x8xbf16, #tpu.memory_space<vmem>>, vector<1x1x32x8xbf16>
    %45 = vector.shape_cast %44 : vector<1x1x32x8xbf16> to vector<32x8xbf16>
    %cst_49 = arith.constant dense<0.000000e+00> : vector<8x8xf32>
    %46 = tpu.matmul %2, %45, %cst_49 {dimension_numbers = #tpu.dot_dimension_numbers<[1], [0], [0], [1], [0, 0, 1, 1], [], []>} : vector<8x32xbf16>, vector<32x8xbf16>, vector<8x8xf32> -> vector<8x8xf32>
    %c0_50 = arith.constant 0 : index
    %c1_51 = arith.constant 1 : index
    %c0_52 = arith.constant 0 : index
    %c0_53 = arith.constant 0 : index
    %47 = vector.load %arg6[%c0_50, %c1_51, %c0_52, %c0_53] : memref<3x4x1x8xf32, #tpu.memory_space<vmem>>, vector<1x1x1x8xf32>
    %48 = vector.shape_cast %47 : vector<1x1x1x8xf32> to vector<1x8xf32>
    %49 = vector.broadcast %48 : vector<1x8xf32> to vector<8x8xf32>
    %50 = arith.addf %46, %49 : vector<8x8xf32>
    %c1_54 = arith.constant 1 : index
    %c1_55 = arith.constant 1 : index
    %c0_56 = arith.constant 0 : index
    %c0_57 = arith.constant 0 : index
    %51 = vector.load %arg5[%c1_54, %c1_55, %c0_56, %c0_57] : memref<3x4x32x8xbf16, #tpu.memory_space<vmem>>, vector<1x1x32x8xbf16>
    %52 = vector.shape_cast %51 : vector<1x1x32x8xbf16> to vector<32x8xbf16>
    %cst_58 = arith.constant dense<0.000000e+00> : vector<8x8xf32>
    %53 = tpu.matmul %5, %52, %cst_58 {dimension_numbers = #tpu.dot_dimension_numbers<[1], [0], [0], [1], [0, 0, 1, 1], [], []>} : vector<8x32xbf16>, vector<32x8xbf16>, vector<8x8xf32> -> vector<8x8xf32>
    %c1_59 = arith.constant 1 : index
    %c1_60 = arith.constant 1 : index
    %c0_61 = arith.constant 0 : index
    %c0_62 = arith.constant 0 : index
    %54 = vector.load %arg6[%c1_59, %c1_60, %c0_61, %c0_62] : memref<3x4x1x8xf32, #tpu.memory_space<vmem>>, vector<1x1x1x8xf32>
    %55 = vector.shape_cast %54 : vector<1x1x1x8xf32> to vector<1x8xf32>
    %56 = vector.broadcast %55 : vector<1x8xf32> to vector<8x8xf32>
    %57 = arith.addf %53, %56 : vector<8x8xf32>
    %c2_63 = arith.constant 2 : index
    %c1_64 = arith.constant 1 : index
    %c0_65 = arith.constant 0 : index
    %c0_66 = arith.constant 0 : index
    %58 = vector.load %arg5[%c2_63, %c1_64, %c0_65, %c0_66] : memref<3x4x32x8xbf16, #tpu.memory_space<vmem>>, vector<1x1x32x8xbf16>
    %59 = vector.shape_cast %58 : vector<1x1x32x8xbf16> to vector<32x8xbf16>
    %cst_67 = arith.constant dense<0.000000e+00> : vector<8x8xf32>
    %60 = tpu.matmul %8, %59, %cst_67 {dimension_numbers = #tpu.dot_dimension_numbers<[1], [0], [0], [1], [0, 0, 1, 1], [], []>} : vector<8x32xbf16>, vector<32x8xbf16>, vector<8x8xf32> -> vector<8x8xf32>
    %c2_68 = arith.constant 2 : index
    %c1_69 = arith.constant 1 : index
    %c0_70 = arith.constant 0 : index
    %c0_71 = arith.constant 0 : index
    %61 = vector.load %arg6[%c2_68, %c1_69, %c0_70, %c0_71] : memref<3x4x1x8xf32, #tpu.memory_space<vmem>>, vector<1x1x1x8xf32>
    %62 = vector.shape_cast %61 : vector<1x1x1x8xf32> to vector<1x8xf32>
    %63 = vector.broadcast %62 : vector<1x8xf32> to vector<8x8xf32>
    %64 = arith.addf %60, %63 : vector<8x8xf32>
    %cst_72 = arith.constant 0.353553385 : f32
    %65 = vector.broadcast %cst_72 : f32 to vector<8x8xf32>
    %66 = arith.mulf %50, %65 : vector<8x8xf32>
    %67 = arith.truncf %66 : vector<8x8xf32> to vector<8x8xbf16>
    %c0_73 = arith.constant 0 : index
    %c1_74 = arith.constant 1 : index
    %c0_75 = arith.constant 0 : index
    %c0_76 = arith.constant 0 : index
    %68 = vector.load %arg7[%c0_73, %c1_74, %c0_75, %c0_76] : memref<1x4x8x8xbf16, #tpu.memory_space<vmem>>, vector<1x1x8x8xbf16>
    %69 = vector.shape_cast %68 : vector<1x1x8x8xbf16> to vector<8x8xbf16>
    %70 = vector.shape_cast %67 : vector<8x8xbf16> to vector<1x1x8x8xbf16>
    tpu.vector_store %arg7[%c0_73, %c1_74, %c0_75, %c0_76], %70 {strides = array<i32>} : memref<1x4x8x8xbf16, #tpu.memory_space<vmem>>, vector<1x1x8x8xbf16>,
    %71 = arith.truncf %57 : vector<8x8xf32> to vector<8x8xbf16>
    %c0_77 = arith.constant 0 : index
    %c1_78 = arith.constant 1 : index
    %c0_79 = arith.constant 0 : index
    %c0_80 = arith.constant 0 : index
    %72 = vector.load %arg8[%c0_77, %c1_78, %c0_79, %c0_80] : memref<1x4x8x8xbf16, #tpu.memory_space<vmem>>, vector<1x1x8x8xbf16>
    %73 = vector.shape_cast %72 : vector<1x1x8x8xbf16> to vector<8x8xbf16>
    %74 = vector.shape_cast %71 : vector<8x8xbf16> to vector<1x1x8x8xbf16>
    tpu.vector_store %arg8[%c0_77, %c1_78, %c0_79, %c0_80], %74 {strides = array<i32>} : memref<1x4x8x8xbf16, #tpu.memory_space<vmem>>, vector<1x1x8x8xbf16>,
    %75 = arith.truncf %64 : vector<8x8xf32> to vector<8x8xbf16>
    %c0_81 = arith.constant 0 : index
    %c1_82 = arith.constant 1 : index
    %c0_83 = arith.constant 0 : index
    %c0_84 = arith.constant 0 : index
    %76 = vector.load %arg9[%c0_81, %c1_82, %c0_83, %c0_84] : memref<1x4x8x8xbf16, #tpu.memory_space<vmem>>, vector<1x1x8x8xbf16>
    %77 = vector.shape_cast %76 : vector<1x1x8x8xbf16> to vector<8x8xbf16>
    %78 = vector.shape_cast %75 : vector<8x8xbf16> to vector<1x1x8x8xbf16>
    tpu.vector_store %arg9[%c0_81, %c1_82, %c0_83, %c0_84], %78 {strides = array<i32>} : memref<1x4x8x8xbf16, #tpu.memory_space<vmem>>, vector<1x1x8x8xbf16>,
    %c0_85 = arith.constant 0 : index
    %c2_86 = arith.constant 2 : index
    %c0_87 = arith.constant 0 : index
    %c0_88 = arith.constant 0 : index
    %79 = vector.load %arg5[%c0_85, %c2_86, %c0_87, %c0_88] : memref<3x4x32x8xbf16, #tpu.memory_space<vmem>>, vector<1x1x32x8xbf16>
    %80 = vector.shape_cast %79 : vector<1x1x32x8xbf16> to vector<32x8xbf16>
    %cst_89 = arith.constant dense<0.000000e+00> : vector<8x8xf32>
    %81 = tpu.matmul %2, %80, %cst_89 {dimension_numbers = #tpu.dot_dimension_numbers<[1], [0], [0], [1], [0, 0, 1, 1], [], []>} : vector<8x32xbf16>, vector<32x8xbf16>, vector<8x8xf32> -> vector<8x8xf32>
    %c0_90 = arith.constant 0 : index
    %c2_91 = arith.constant 2 : index
    %c0_92 = arith.constant 0 : index
    %c0_93 = arith.constant 0 : index
    %82 = vector.load %arg6[%c0_90, %c2_91, %c0_92, %c0_93] : memref<3x4x1x8xf32, #tpu.memory_space<vmem>>, vector<1x1x1x8xf32>
    %83 = vector.shape_cast %82 : vector<1x1x1x8xf32> to vector<1x8xf32>
    %84 = vector.broadcast %83 : vector<1x8xf32> to vector<8x8xf32>
    %85 = arith.addf %81, %84 : vector<8x8xf32>
    %c1_94 = arith.constant 1 : index
    %c2_95 = arith.constant 2 : index
    %c0_96 = arith.constant 0 : index
    %c0_97 = arith.constant 0 : index
    %86 = vector.load %arg5[%c1_94, %c2_95, %c0_96, %c0_97] : memref<3x4x32x8xbf16, #tpu.memory_space<vmem>>, vector<1x1x32x8xbf16>
    %87 = vector.shape_cast %86 : vector<1x1x32x8xbf16> to vector<32x8xbf16>
    %cst_98 = arith.constant dense<0.000000e+00> : vector<8x8xf32>
    %88 = tpu.matmul %5, %87, %cst_98 {dimension_numbers = #tpu.dot_dimension_numbers<[1], [0], [0], [1], [0, 0, 1, 1], [], []>} : vector<8x32xbf16>, vector<32x8xbf16>, vector<8x8xf32> -> vector<8x8xf32>
    %c1_99 = arith.constant 1 : index
    %c2_100 = arith.constant 2 : index
    %c0_101 = arith.constant 0 : index
    %c0_102 = arith.constant 0 : index
    %89 = vector.load %arg6[%c1_99, %c2_100, %c0_101, %c0_102] : memref<3x4x1x8xf32, #tpu.memory_space<vmem>>, vector<1x1x1x8xf32>
    %90 = vector.shape_cast %89 : vector<1x1x1x8xf32> to vector<1x8xf32>
    %91 = vector.broadcast %90 : vector<1x8xf32> to vector<8x8xf32>
    %92 = arith.addf %88, %91 : vector<8x8xf32>
    %c2_103 = arith.constant 2 : index
    %c2_104 = arith.constant 2 : index
    %c0_105 = arith.constant 0 : index
    %c0_106 = arith.constant 0 : index
    %93 = vector.load %arg5[%c2_103, %c2_104, %c0_105, %c0_106] : memref<3x4x32x8xbf16, #tpu.memory_space<vmem>>, vector<1x1x32x8xbf16>
    %94 = vector.shape_cast %93 : vector<1x1x32x8xbf16> to vector<32x8xbf16>
    %cst_107 = arith.constant dense<0.000000e+00> : vector<8x8xf32>
    %95 = tpu.matmul %8, %94, %cst_107 {dimension_numbers = #tpu.dot_dimension_numbers<[1], [0], [0], [1], [0, 0, 1, 1], [], []>} : vector<8x32xbf16>, vector<32x8xbf16>, vector<8x8xf32> -> vector<8x8xf32>
    %c2_108 = arith.constant 2 : index
    %c2_109 = arith.constant 2 : index
    %c0_110 = arith.constant 0 : index
    %c0_111 = arith.constant 0 : index
    %96 = vector.load %arg6[%c2_108, %c2_109, %c0_110, %c0_111] : memref<3x4x1x8xf32, #tpu.memory_space<vmem>>, vector<1x1x1x8xf32>
    %97 = vector.shape_cast %96 : vector<1x1x1x8xf32> to vector<1x8xf32>
    %98 = vector.broadcast %97 : vector<1x8xf32> to vector<8x8xf32>
    %99 = arith.addf %95, %98 : vector<8x8xf32>
    %cst_112 = arith.constant 0.353553385 : f32
    %100 = vector.broadcast %cst_112 : f32 to vector<8x8xf32>
    %101 = arith.mulf %85, %100 : vector<8x8xf32>
    %102 = arith.truncf %101 : vector<8x8xf32> to vector<8x8xbf16>
    %c0_113 = arith.constant 0 : index
    %c2_114 = arith.constant 2 : index
    %c0_115 = arith.constant 0 : index
    %c0_116 = arith.constant 0 : index
    %103 = vector.load %arg7[%c0_113, %c2_114, %c0_115, %c0_116] : memref<1x4x8x8xbf16, #tpu.memory_space<vmem>>, vector<1x1x8x8xbf16>
    %104 = vector.shape_cast %103 : vector<1x1x8x8xbf16> to vector<8x8xbf16>
    %105 = vector.shape_cast %102 : vector<8x8xbf16> to vector<1x1x8x8xbf16>
    tpu.vector_store %arg7[%c0_113, %c2_114, %c0_115, %c0_116], %105 {strides = array<i32>} : memref<1x4x8x8xbf16, #tpu.memory_space<vmem>>, vector<1x1x8x8xbf16>,
    %106 = arith.truncf %92 : vector<8x8xf32> to vector<8x8xbf16>
    %c0_117 = arith.constant 0 : index
    %c2_118 = arith.constant 2 : index
    %c0_119 = arith.constant 0 : index
    %c0_120 = arith.constant 0 : index
    %107 = vector.load %arg8[%c0_117, %c2_118, %c0_119, %c0_120] : memref<1x4x8x8xbf16, #tpu.memory_space<vmem>>, vector<1x1x8x8xbf16>
    %108 = vector.shape_cast %107 : vector<1x1x8x8xbf16> to vector<8x8xbf16>
    %109 = vector.shape_cast %106 : vector<8x8xbf16> to vector<1x1x8x8xbf16>
    tpu.vector_store %arg8[%c0_117, %c2_118, %c0_119, %c0_120], %109 {strides = array<i32>} : memref<1x4x8x8xbf16, #tpu.memory_space<vmem>>, vector<1x1x8x8xbf16>,
    %110 = arith.truncf %99 : vector<8x8xf32> to vector<8x8xbf16>
    %c0_121 = arith.constant 0 : index
    %c2_122 = arith.constant 2 : index
    %c0_123 = arith.constant 0 : index
    %c0_124 = arith.constant 0 : index
    %111 = vector.load %arg9[%c0_121, %c2_122, %c0_123, %c0_124] : memref<1x4x8x8xbf16, #tpu.memory_space<vmem>>, vector<1x1x8x8xbf16>
    %112 = vector.shape_cast %111 : vector<1x1x8x8xbf16> to vector<8x8xbf16>
    %113 = vector.shape_cast %110 : vector<8x8xbf16> to vector<1x1x8x8xbf16>
    tpu.vector_store %arg9[%c0_121, %c2_122, %c0_123, %c0_124], %113 {strides = array<i32>} : memref<1x4x8x8xbf16, #tpu.memory_space<vmem>>, vector<1x1x8x8xbf16>,
    %c0_125 = arith.constant 0 : index
    %c3 = arith.constant 3 : index
    %c0_126 = arith.constant 0 : index
    %c0_127 = arith.constant 0 : index
    %114 = vector.load %arg5[%c0_125, %c3, %c0_126, %c0_127] : memref<3x4x32x8xbf16, #tpu.memory_space<vmem>>, vector<1x1x32x8xbf16>
    %115 = vector.shape_cast %114 : vector<1x1x32x8xbf16> to vector<32x8xbf16>
    %cst_128 = arith.constant dense<0.000000e+00> : vector<8x8xf32>
    %116 = tpu.matmul %2, %115, %cst_128 {dimension_numbers = #tpu.dot_dimension_numbers<[1], [0], [0], [1], [0, 0, 1, 1], [], []>} : vector<8x32xbf16>, vector<32x8xbf16>, vector<8x8xf32> -> vector<8x8xf32>
    %c0_129 = arith.constant 0 : index
    %c3_130 = arith.constant 3 : index
    %c0_131 = arith.constant 0 : index
    %c0_132 = arith.constant 0 : index
    %117 = vector.load %arg6[%c0_129, %c3_130, %c0_131, %c0_132] : memref<3x4x1x8xf32, #tpu.memory_space<vmem>>, vector<1x1x1x8xf32>
    %118 = vector.shape_cast %117 : vector<1x1x1x8xf32> to vector<1x8xf32>
    %119 = vector.broadcast %118 : vector<1x8xf32> to vector<8x8xf32>
    %120 = arith.addf %116, %119 : vector<8x8xf32>
    %c1_133 = arith.constant 1 : index
    %c3_134 = arith.constant 3 : index
    %c0_135 = arith.constant 0 : index
    %c0_136 = arith.constant 0 : index
    %121 = vector.load %arg5[%c1_133, %c3_134, %c0_135, %c0_136] : memref<3x4x32x8xbf16, #tpu.memory_space<vmem>>, vector<1x1x32x8xbf16>
    %122 = vector.shape_cast %121 : vector<1x1x32x8xbf16> to vector<32x8xbf16>
    %cst_137 = arith.constant dense<0.000000e+00> : vector<8x8xf32>
    %123 = tpu.matmul %5, %122, %cst_137 {dimension_numbers = #tpu.dot_dimension_numbers<[1], [0], [0], [1], [0, 0, 1, 1], [], []>} : vector<8x32xbf16>, vector<32x8xbf16>, vector<8x8xf32> -> vector<8x8xf32>
    %c1_138 = arith.constant 1 : index
    %c3_139 = arith.constant 3 : index
    %c0_140 = arith.constant 0 : index
    %c0_141 = arith.constant 0 : index
    %124 = vector.load %arg6[%c1_138, %c3_139, %c0_140, %c0_141] : memref<3x4x1x8xf32, #tpu.memory_space<vmem>>, vector<1x1x1x8xf32>
    %125 = vector.shape_cast %124 : vector<1x1x1x8xf32> to vector<1x8xf32>
    %126 = vector.broadcast %125 : vector<1x8xf32> to vector<8x8xf32>
    %127 = arith.addf %123, %126 : vector<8x8xf32>
    %c2_142 = arith.constant 2 : index
    %c3_143 = arith.constant 3 : index
    %c0_144 = arith.constant 0 : index
    %c0_145 = arith.constant 0 : index
    %128 = vector.load %arg5[%c2_142, %c3_143, %c0_144, %c0_145] : memref<3x4x32x8xbf16, #tpu.memory_space<vmem>>, vector<1x1x32x8xbf16>
    %129 = vector.shape_cast %128 : vector<1x1x32x8xbf16> to vector<32x8xbf16>
    %cst_146 = arith.constant dense<0.000000e+00> : vector<8x8xf32>
    %130 = tpu.matmul %8, %129, %cst_146 {dimension_numbers = #tpu.dot_dimension_numbers<[1], [0], [0], [1], [0, 0, 1, 1], [], []>} : vector<8x32xbf16>, vector<32x8xbf16>, vector<8x8xf32> -> vector<8x8xf32>
    %c2_147 = arith.constant 2 : index
    %c3_148 = arith.constant 3 : index
    %c0_149 = arith.constant 0 : index
    %c0_150 = arith.constant 0 : index
    %131 = vector.load %arg6[%c2_147, %c3_148, %c0_149, %c0_150] : memref<3x4x1x8xf32, #tpu.memory_space<vmem>>, vector<1x1x1x8xf32>
    %132 = vector.shape_cast %131 : vector<1x1x1x8xf32> to vector<1x8xf32>
    %133 = vector.broadcast %132 : vector<1x8xf32> to vector<8x8xf32>
    %134 = arith.addf %130, %133 : vector<8x8xf32>
    %cst_151 = arith.constant 0.353553385 : f32
    %135 = vector.broadcast %cst_151 : f32 to vector<8x8xf32>
    %136 = arith.mulf %120, %135 : vector<8x8xf32>
    %137 = arith.truncf %136 : vector<8x8xf32> to vector<8x8xbf16>
    %c0_152 = arith.constant 0 : index
    %c3_153 = arith.constant 3 : index
    %c0_154 = arith.constant 0 : index
    %c0_155 = arith.constant 0 : index
    %138 = vector.load %arg7[%c0_152, %c3_153, %c0_154, %c0_155] : memref<1x4x8x8xbf16, #tpu.memory_space<vmem>>, vector<1x1x8x8xbf16>
    %139 = vector.shape_cast %138 : vector<1x1x8x8xbf16> to vector<8x8xbf16>
    %140 = vector.shape_cast %137 : vector<8x8xbf16> to vector<1x1x8x8xbf16>
    tpu.vector_store %arg7[%c0_152, %c3_153, %c0_154, %c0_155], %140 {strides = array<i32>} : memref<1x4x8x8xbf16, #tpu.memory_space<vmem>>, vector<1x1x8x8xbf16>,
    %141 = arith.truncf %127 : vector<8x8xf32> to vector<8x8xbf16>
    %c0_156 = arith.constant 0 : index
    %c3_157 = arith.constant 3 : index
    %c0_158 = arith.constant 0 : index
    %c0_159 = arith.constant 0 : index
    %142 = vector.load %arg8[%c0_156, %c3_157, %c0_158, %c0_159] : memref<1x4x8x8xbf16, #tpu.memory_space<vmem>>, vector<1x1x8x8xbf16>
    %143 = vector.shape_cast %142 : vector<1x1x8x8xbf16> to vector<8x8xbf16>
    %144 = vector.shape_cast %141 : vector<8x8xbf16> to vector<1x1x8x8xbf16>
    tpu.vector_store %arg8[%c0_156, %c3_157, %c0_158, %c0_159], %144 {strides = array<i32>} : memref<1x4x8x8xbf16, #tpu.memory_space<vmem>>, vector<1x1x8x8xbf16>,
    %145 = arith.truncf %134 : vector<8x8xf32> to vector<8x8xbf16>
    %c0_160 = arith.constant 0 : index
    %c3_161 = arith.constant 3 : index
    %c0_162 = arith.constant 0 : index
    %c0_163 = arith.constant 0 : index
    %146 = vector.load %arg9[%c0_160, %c3_161, %c0_162, %c0_163] : memref<1x4x8x8xbf16, #tpu.memory_space<vmem>>, vector<1x1x8x8xbf16>
    %147 = vector.shape_cast %146 : vector<1x1x8x8xbf16> to vector<8x8xbf16>
    %148 = vector.shape_cast %145 : vector<8x8xbf16> to vector<1x1x8x8xbf16>
    tpu.vector_store %arg9[%c0_160, %c3_161, %c0_162, %c0_163], %148 {strides = array<i32>} : memref<1x4x8x8xbf16, #tpu.memory_space<vmem>>, vector<1x1x8x8xbf16>,
    return
  }
  func.func @transform_0(%arg0: i32, %arg1: i32) -> (i32, i32, i32) {
    %c0_i32 = arith.constant 0 : i32
    %c0_i32_0 = arith.constant 0 : i32
    return %arg0, %arg1, %c0_i32 : i32, i32, i32
  }
  func.func @transform_1(%arg0: i32, %arg1: i32) -> (i32, i32, i32) {
    %c0_i32 = arith.constant 0 : i32
    %c0_i32_0 = arith.constant 0 : i32
    return %arg0, %arg1, %c0_i32 : i32, i32, i32
  }
  func.func @transform_2(%arg0: i32, %arg1: i32) -> (i32, i32, i32) {
    %c0_i32 = arith.constant 0 : i32
    %c0_i32_0 = arith.constant 0 : i32
    return %arg0, %arg1, %c0_i32 : i32, i32, i32
  }
  func.func @transform_3(%arg0: i32, %arg1: i32) -> (i32, i32, i32, i32) {
    %c0_i32 = arith.constant 0 : i32
    %c0_i32_0 = arith.constant 0 : i32
    %c0_i32_1 = arith.constant 0 : i32
    %c0_i32_2 = arith.constant 0 : i32
    %c0_i32_3 = arith.constant 0 : i32
    return %c0_i32, %c0_i32_0, %c0_i32_1, %c0_i32_2 : i32, i32, i32, i32
  }
  func.func @transform_4(%arg0: i32, %arg1: i32) -> (i32, i32, i32, i32) {
    %c0_i32 = arith.constant 0 : i32
    %c0_i32_0 = arith.constant 0 : i32
    %c0_i32_1 = arith.constant 0 : i32
    %c0_i32_2 = arith.constant 0 : i32
    %c0_i32_3 = arith.constant 0 : i32
    return %c0_i32, %c0_i32_0, %c0_i32_1, %c0_i32_2 : i32, i32, i32, i32
  }
  func.func @transform_5(%arg0: i32, %arg1: i32) -> (i32, i32, i32, i32) {
    %c0_i32 = arith.constant 0 : i32
    %c0_i32_0 = arith.constant 0 : i32
    %c0_i32_1 = arith.constant 0 : i32
    return %arg0, %c0_i32, %arg1, %c0_i32_0 : i32, i32, i32, i32
  }
  func.func @transform_6(%arg0: i32, %arg1: i32) -> (i32, i32, i32, i32) {
    %c0_i32 = arith.constant 0 : i32
    %c0_i32_0 = arith.constant 0 : i32
    %c0_i32_1 = arith.constant 0 : i32
    return %arg0, %c0_i32, %arg1, %c0_i32_0 : i32, i32, i32, i32
  }
  func.func @transform_7(%arg0: i32, %arg1: i32) -> (i32, i32, i32, i32) {
    %c0_i32 = arith.constant 0 : i32
    %c0_i32_0 = arith.constant 0 : i32
    %c0_i32_1 = arith.constant 0 : i32
    return %arg0, %c0_i32, %arg1, %c0_i32_0 : i32, i32, i32, i32
  }
}

</mosaic_0001>

<bundles_post_ra>
// kernel: tpu_custom_call.1
= control target key start
LH: loop header
LB: loop body
LE: loop exit
PB: predicated region body
PF: predicated region fallthrough
CT: control target
= control target key end

     0   :  { %s2415_s0 = inlined_call_operand.vmem [shape: f32[2,8,32], index: 0, kind: input, shape index: {}]   ;;  %s2416_s1 = inlined_call_operand.vmem [shape: f32[2,8,32], index: 1, kind: input, shape index: {}]   ;;  %s2417_s2 = inlined_call_operand.vmem [shape: f32[2,8,32], index: 2, kind: input, shape index: {}]   ;;  %s2418_s3 = inlined_call_operand.vmem [shape: bf16[3,4,32,8], index: 3, kind: input, shape index: {}]   ;;  %s2419_s4 = inlined_call_operand.vmem [shape: f32[3,4,1,8], index: 4, kind: input, shape index: {}]   ;;  %s2420_s5 = inlined_call_operand.hbm [shape: bf16[2,4,8,8], index: 5, kind: output, shape index: {0}]   ;;  %s2421_s6 = inlined_call_operand.hbm [shape: bf16[2,4,8,8], index: 6, kind: output, shape index: {1}]   ;;  %s2422_s7 = inlined_call_operand.hbm [shape: bf16[2,4,8,8], index: 7, kind: output, shape index: {2}]  }
   0x1   :  { %2427 = sst [smem:[#allocation9_spill]] %s2415_s0 }
   0x2   :  { %2428 = sst [smem:[#allocation10_spill]] %s2416_s1 }
   0x3   :  { %13 = vsyncpa [#allocation3], 0 }
   0x4   :  { %15 = vsyncpa [#allocation3 + $0x1], 0 }
   0x5   :  { %16 = vsyncpa [#allocation5], 0 }
   0x6   :  { %18 = vsyncpa [#allocation5 + $0x1], 0  ;;  %s1982_s24 = smov 0   ;;  %s1984_s25 = smov 0  }
   0x7   :  { %s1986_s26 = smov 0   ;;  %s1988_s27 = smov 0  }
   0x8   :  { %s1990_s28 = smov 0   ;;  %s1992_s29 = smov 0  }
   0x9 LB: > { %s1439_s30 = sadd.s32 4294967295, %s1933_s29   ;;  %s2423_s8 = sadd.s32 4294967294, %s1933_s29   ;;  %s1933_s29 = sphi %s1992_s29, %s24_s29   ;;  %s1929_s28 = sphi %s1990_s28, %s2441_s28   ;;  %s1925_s27 = sphi %s1988_s27, %s2440_s27   ;;  %s1921_s26 = sphi %s1986_s26, %s2439_s26   ;;  %s1917_s25 = sphi %s1984_s25, %s2438_s25   ;;  %s1913_s24 = sphi %s1982_s24, %s2437_s24  }
   0xa   : > { %s36_s9 = sadd.s32 1, %s1929_s28  ;;  %s171_s10 = sadd.s32 1, %s1921_s26 }
   0xb   : > { %p38_p0 = scmp.ge.s32.totalorder %s36_s9, 2  ;;  %p181_p1 = scmp.ne.s32.totalorder %s1921_s26, %s1917_s25 }
   0xc   : > { %p182_p2 = scmp.eq.s32.totalorder %s1439_s30, 1  ;;  %p187_p3 = scmp.ne.s32.totalorder %s1917_s25, %s1913_s24 }
   0xd   : > { %s2443_s9 = smov (%p38_p0, %s36_s9), 0  ;;  %p188_p5 = scmp.eq.s32.totalorder %s2423_s8, 1 }
   0xe   : > { %p2024_p4 = por %p182_p2, %p181_p1  ;;  %s166_s12 = ssub.s32 %s1929_s28, %s2443_s9 }
   0xf   : > { %p1443_p6 = scmp.ge.s32.totalorder %s1933_s29, 1  ;;  %p169_p7 = scmp.eq.s32.totalorder %s166_s12, 0 }
  0x10   : > { %p2033_p8 = por %p188_p5, %p187_p3  ;;  %p298_p9 = scmp.lt.s32.totalorder %s1933_s29, 3 }
  0x11   : > { %s2039_s14 = scalar_select %p169_p7, %s1921_s26, %s171_s10  }
  0x12   : > { %p299_p10 = pnand %p1443_p6, %p298_p9 }
  0x13   : > { %p356_p11 = scmp.lt.s32.totalorder (!%p299_p10), %s1925_s27, 1  ;;  %s2431_s0 = sld [smem:[#allocation9_spill]] (!%p299_p10) }
  0x14   : > { %302 = sbr.rel (%p299_p10) target bundleno = 327 (0x147), region = 40  ;;  %s2432_s1 = sld [smem:[#allocation10_spill]] (!%p299_p10) }
  0x15   : > { %s2424_s16 = sand.u32 (!%p299_p10), 1, %s1917_s25   ;;  %s2264_s22 = sshll.u32 (!%p299_p10), %s1925_s27, 8 }
  0x16   : > { %s2211_s19 = sshll.u32 (!%p299_p10), %s2424_s16, 4  ;;  %s2274_s8 = scalar_lea.hbm (!%p299_p10), %s2420_s5, %s2264_s22 }
  0x17   : > { %s2214_s20 = scalar_lea.vmem (!%p299_p10), [#allocation4], %s2211_s19  ;;  %s2230_s17 = scalar_lea.vmem (!%p299_p10), [#allocation6], %s2211_s19 }
  0x19   : > { %v1777_v0 = vld [vmem:[%s2418_s3 + $0x8] sm:$0xff]   ;;  %v1935_v1 = vmov 0.0   ;;  %v1779_v3 = vld [vmem:[%s2418_s3] sm:$0xff]   ;;  %vm1936_vm0 = vmmov 0   ;;  %s357_s23 = scalar_select %p356_p11, %s1925_s27, 1  ;;  %v1782_v6 = vld [vmem:[%s2418_s3 + $0x18] sm:$0xff]  }
  0x1a   : > { %1612 = vmatprep.subr.bf16.mxu0 %v1935_v1  ;;  %1620 = vmatprep.subr.bf16.mxu1 %v1935_v1  ;;  %v1778_v2 = vld [vmem:[%s2418_s3 + $0x48] sm:$0xff]   ;;  %v1780_v4 = vld [vmem:[%s2418_s3 + $0x40] sm:$0xff]   ;;  %vm407_vm1 = vcmask 261120   ;;  %v1784_v12 = vld [vmem:[%s2418_s3 + $0x10] sm:$0xff]   ;;  %vm589_vm2 = vcmask 60416   ;;  %s1937_s27 = smov [#allocation2]  }
  0x1b   : > { %1613 = vmatpush3.bf16.msra.mxu0 %v1777_v0  ;;  %1616 = vmatprep.mubr.msk.bf16.mxu0 %vm1936_vm0, %v1935_v1  ;;  %s1447_s10 = sshll.u32 %s357_s23, 3  ;;  %v1781_v5 = vld [vmem:[%s2418_s3 + $0x88] sm:$0xff]   ;;  %v1783_v11 = vld [vmem:[%s2418_s3 + $0x80] sm:$0xff]   ;;  %v1785_v15 = vld [vmem:[%s2418_s3 + $0x58] sm:$0xff]   ;;  %s2433_s23 = sand.u32 1, %s1917_s25  }
  0x1c   : > { %1621 = vmatpush3.bf16.msra.mxu1 %v1778_v2  ;;  %1614 = vmatprep.subr.bf16.mxu0 %v1935_v1  ;;  %s362_s18 = scalar_lea.vmem %s2431_s0, %s1447_s10  ;;  %s369_s21 = scalar_lea.vmem %s2432_s1, %s1447_s10  ;;  %v1786_v16 = vld [vmem:[%s2418_s3 + $0x98] sm:$0xff]   ;;  %v1787_v17 = vld [vmem:[%s2418_s3 + $0x50] sm:$0xff]   ;;  %v1789_v19 = vld [vmem:[%s2418_s3 + $0x28] sm:$0xff]  }
  0x1d   : > { %1622 = vmatprep.subr.bf16.mxu1 %v1935_v1  ;;  %1624 = vmatprep.mubr.msk.bf16.mxu1 %vm1936_vm0, %v1935_v1  ;;  %v378_v7 = vld [vmem:[%s362_s18] sm:$0xff]  ;;  %s376_s15 = scalar_lea.vmem %s2417_s2, %s1447_s10  ;;  %v1788_v18 = vld [vmem:[%s2418_s3 + $0x90] sm:$0xff]   ;;  %v1790_v20 = vld [vmem:[%s2418_s3 + $0x68] sm:$0xff]   ;;  %s2287_s0 = sand.u32 1, %s1439_s30  }
  0x1e   : > { %v380_v8 = vld [vmem:[%s369_s21] sm:$0xff]  ;;  %v2077_v9 = vpack.c.bf16 %v378_v7, %v378_v7  ;;  %v1793_v23 = vld [vmem:[%s2418_s3 + $0xa8] sm:$0xff]   ;;  %v1794_v24 = vld [vmem:[%s2418_s3 + $0x38] sm:$0xff]   ;;  %s2291_s12 = scalar_lea.sflag [#allocation3], %s2433_s23  ;;  %s1805_s18 = sshll.u32 %s1937_s27, 4  ;;  %s1806_s18 = int_to_ptr.vmem [resolvable:$false] %s1805_s18 }
  0x1f   : > { %1615 = vmatpush3.bf16.msra.mxu0 %v1779_v3  ;;  %v2079_v10 = vpack.c.bf16 %v380_v8, %v380_v8  ;;  %v382_v13 = vld [vmem:[%s376_s15] sm:$0xff]  ;;  %v1796_v26 = vld [vmem:[%s2418_s3 + $0x30] sm:$0xff]   ;;  %v1797_v27 = vld [vmem:[%s2418_s3 + $0x78] sm:$0xff]   ;;  %s2225_s15 = scalar_lea.vmem [#allocation2], %s2211_s19  ;;  %s1807_s10 = scalar_lea.vmem %s1806_s18, 512 }
  0x20   : > { %1623 = vmatpush3.bf16.msra.mxu1 %v1780_v4  ;;  %1628 = vmatprep.subr.bf16.mxu0 %v1935_v1  ;;  %v2100_v14 = vpack.c.bf16 %v382_v13, %v382_v13  ;;  %v1791_v21 = vld [vmem:[%s2418_s3 + $0x20] sm:$0xff]   ;;  %v1798_v28 = vld [vmem:[%s2418_s3 + $0xb8] sm:$0xff]   ;;  %v1799_v29 = vld [vmem:[%s2418_s3 + $0x70] sm:$0xff]   ;;  %s1235_s19 = sshll.u32 %s2225_s15, 4  ;;  %s2266_s19 = int_to_ptr.vmem [resolvable:$true] %s1235_s19 }
  0x21   : > { %1636 = vmatprep.subr.bf16.mxu1 %v1935_v1  ;;  %v1792_v22 = vld [vmem:[%s2418_s3 + $0x60] sm:$0xff]   ;;  %v1800_v30 = vld [vmem:[%s2418_s3 + $0xb0] sm:$0xff]   ;;  %v1468_v46 = vld [vmem:[%s2419_s4 + $0x8] ss:$0 sm:$0xff]  ;;  %s1801_s1 = scalar_lea.vmem %s2266_s19, 256  ;;  %p1808_p1 = scmp.lt.s32.totalorder %s2266_s19, %s1806_s18 }
  0x22   : > { %1617 = vmatmul.mubr.msk.bf16.vlgmr.msra.gmra.mxu0 %vm407_vm1, %v2077_v9  ;;  %v1795_v25 = vld [vmem:[%s2418_s3 + $0xa0] sm:$0xff]   ;;  %v1495_v62 = vld [vmem:[%s2419_s4 + $0x9] ss:$0 sm:$0xff]  ;;  %p1802_p12 = scmp.ne.s32.totalorder %s2266_s19, %s1801_s1  ;;  %p1809_p2 = scmp.lt.s32.totalorder %s1807_s10, %s1801_s1 }
  0x23   : > { %1625 = vmatmul.mubr.msk.bf16.vlgmr.msra.gmra.mxu1 %vm407_vm1, %v2079_v10  ;;  %1629 = vmatpush3.bf16.msra.mxu0 %v1781_v5  ;;  %v1450_v31 = vld [vmem:[%s2419_s4] ss:$0 sm:$0xff]  ;;  %v1459_v32 = vld [vmem:[%s2419_s4 + $0x4] ss:$0 sm:$0xff]  ;;  %v1477_v47 = vld [vmem:[%s2419_s4 + $0x1] ss:$0 sm:$0xff] }
  0x24   : > { %1637 = vmatpush3.bf16.msra.mxu1 %v1782_v6  ;;  %1630 = vmatprep.subr.bf16.mxu0 %v1935_v1  ;;  %v1486_v61 = vld [vmem:[%s2419_s4 + $0x5] ss:$0 sm:$0xff]  ;;  %p1803_p13 = pnand %p1802_p12, %p2024_p4  ;;  %p1810_p3 = por %p1809_p2, %p1808_p1 }
  0x25   : > { %1638 = vmatprep.subr.bf16.mxu1 %v1935_v1  ;;  %1632 = vmatprep.mubr.msk.bf16.mxu0 %vm1936_vm0, %v1935_v1 }
  0x26   : > { %1640 = vmatprep.mubr.msk.bf16.mxu1 %vm1936_vm0, %v1935_v1  ;;  %p1804_p0 = pneg %p1803_p13 }
  0x27   : > { %1631 = vmatpush3.bf16.msra.mxu0 %v1783_v11  ;;  %v1507_v11 = vld [vmem:[%s2419_s4 + $0x2] ss:$0 sm:$0xff] }
  0x28   : > { %1639 = vmatpush3.bf16.msra.mxu1 %v1784_v12  ;;  %1644 = vmatprep.subr.bf16.mxu0 %v1935_v1  ;;  %v1516_v12 = vld [vmem:[%s2419_s4 + $0x6] ss:$0 sm:$0xff]  ;;  %p1811_p5 = pnand %p1810_p3, %p1804_p0 }
  0x29   : > { %1652 = vmatprep.subr.bf16.mxu1 %v1935_v1 }
  0x2a   : > { %1633 = vmatmul.mubr.msk.bf16.vlgmr.msra.gmra.mxu0 %vm407_vm1, %v2100_v14 }
  0x2b   : > { %1641 = vmatmul.mubr.msk.bf16.vlgmr.msra.gmra.mxu1 %vm407_vm1, %v2077_v9  ;;  %1645 = vmatpush3.bf16.msra.mxu0 %v1785_v15 }
  0x2c   : > { %1653 = vmatpush3.bf16.msra.mxu1 %v1786_v16  ;;  %1646 = vmatprep.subr.bf16.mxu0 %v1935_v1 }
  0x2d   : > { %1654 = vmatprep.subr.bf16.mxu1 %v1935_v1  ;;  %1648 = vmatprep.mubr.msk.bf16.mxu0 %vm1936_vm0, %v1935_v1 }
  0x2e   : > { %1656 = vmatprep.mubr.msk.bf16.mxu1 %vm1936_vm0, %v1935_v1 }
  0x2f   : > { %1647 = vmatpush3.bf16.msra.mxu0 %v1787_v17 }
  0x30   : > { %1655 = vmatpush3.bf16.msra.mxu1 %v1788_v18  ;;  %1660 = vmatprep.subr.bf16.mxu0 %v1935_v1 }
  0x31   : > { %1668 = vmatprep.subr.bf16.mxu1 %v1935_v1 }
  0x32   : > { %1649 = vmatmul.mubr.msk.bf16.vlgmr.msra.gmra.mxu0 %vm407_vm1, %v2079_v10 }
  0x33   : > { %1657 = vmatmul.mubr.msk.bf16.vlgmr.msra.gmra.mxu1 %vm407_vm1, %v2100_v14  ;;  %1661 = vmatpush3.bf16.msra.mxu0 %v1789_v19 }
  0x34   : > { %1669 = vmatpush3.bf16.msra.mxu1 %v1790_v20  ;;  %1662 = vmatprep.subr.bf16.mxu0 %v1935_v1 }
  0x35   : > { %1670 = vmatprep.subr.bf16.mxu1 %v1935_v1  ;;  %1664 = vmatprep.mubr.msk.bf16.mxu0 %vm1936_vm0, %v1935_v1 }
  0x36   : > { %1672 = vmatprep.mubr.msk.bf16.mxu1 %vm1936_vm0, %v1935_v1 }
  0x37   : > { %1663 = vmatpush3.bf16.msra.mxu0 %v1791_v21 }
  0x38   : > { %1671 = vmatpush3.bf16.msra.mxu1 %v1792_v22  ;;  %1676 = vmatprep.subr.bf16.mxu0 %v1935_v1 }
  0x39   : > { %1684 = vmatprep.subr.bf16.mxu1 %v1935_v1 }
  0x3a   : > { %1665 = vmatmul.mubr.msk.bf16.vlgmr.msra.gmra.mxu0 %vm407_vm1, %v2077_v9 }
  0x3b   : > { %1673 = vmatmul.mubr.msk.bf16.vlgmr.msra.gmra.mxu1 %vm407_vm1, %v2079_v10  ;;  %1677 = vmatpush3.bf16.msra.mxu0 %v1793_v23 }
  0x3c   : > { %1685 = vmatpush3.bf16.msra.mxu1 %v1794_v24  ;;  %1678 = vmatprep.subr.bf16.mxu0 %v1935_v1 }
  0x3d   : > { %1686 = vmatprep.subr.bf16.mxu1 %v1935_v1  ;;  %1680 = vmatprep.mubr.msk.bf16.mxu0 %vm1936_vm0, %v1935_v1 }
  0x3e   : > { %1688 = vmatprep.mubr.msk.bf16.mxu1 %vm1936_vm0, %v1935_v1 }
  0x3f   : > { %1679 = vmatpush3.bf16.msra.mxu0 %v1795_v25 }
  0x40   : > { %1687 = vmatpush3.bf16.msra.mxu1 %v1796_v26  ;;  %1692 = vmatprep.subr.bf16.mxu0 %v1935_v1  ;;  %v1525_v26 = vld [vmem:[%s2419_s4 + $0xa] ss:$0 sm:$0xff] }
  0x41   : > { %1700 = vmatprep.subr.bf16.mxu1 %v1935_v1 }
  0x42   : > { %1681 = vmatmul.mubr.msk.bf16.vlgmr.msra.gmra.mxu0 %vm407_vm1, %v2100_v14 }
  0x43   : > { %1689 = vmatmul.mubr.msk.bf16.vlgmr.msra.gmra.mxu1 %vm407_vm1, %v2077_v9  ;;  %1693 = vmatpush3.bf16.msra.mxu0 %v1797_v27  ;;  %v1537_v27 = vld [vmem:[%s2419_s4 + $0x3] ss:$0 sm:$0xff] }
  0x44   : > { %1701 = vmatpush3.bf16.msra.mxu1 %v1798_v28  ;;  %1694 = vmatprep.subr.bf16.mxu0 %v1935_v1 }
  0x45   : > { %1702 = vmatprep.subr.bf16.mxu1 %v1935_v1  ;;  %1696 = vmatprep.mubr.msk.bf16.mxu0 %vm1936_vm0, %v1935_v1 }
  0x46   : > { %1704 = vmatprep.mubr.msk.bf16.mxu1 %vm1936_vm0, %v1935_v1 }
  0x47   : > { %1695 = vmatpush3.bf16.msra.mxu0 %v1799_v29 }
  0x48   : > { %1703 = vmatpush3.bf16.msra.mxu1 %v1800_v30 }
  0x4a   : > { %1697 = vmatmul.mubr.msk.bf16.vlgmr.msra.gmra.mxu0 %vm407_vm1, %v2079_v10 }
  0x4b   : > { %1705 = vmatmul.mubr.msk.bf16.vlgmr.msra.gmra.mxu1 %vm407_vm1, %v2100_v14 }
  0xe2   : > { %v445_v33 = vpop.f32.mrf.mxu0 }
  0xe3   : > { %v513_v34 = vpop.f32.mrf.mxu1  ;;  %v446_v35 = vadd.f32 %v1450_v31, %v445_v33 }
  0xe4   : > { %v514_v36 = vadd.f32 %v1459_v32, %v513_v34  ;;  %v1618_v37 = vpop.f32.mrf.mxu0 }
  0xe5   : > { %v1626_v38 = vpop.f32.mrf.mxu1  ;;  %v587_v39 = vmul.f32 0.35355338, %v446_v35 }
  0xe6   : > { %v591_v40 = vpack.c.bf16 %v514_v36, %v514_v36  ;;  %v448_v41 = vpop.f32.mrf.mxu0 }
  0xe7   : > { %v516_v42 = vpop.f32.mrf.mxu1  ;;  %v588_v43 = vpack.c.bf16 %v587_v39, %v587_v39  ;;  %v1546_v41 = vld [vmem:[%s2419_s4 + $0x7] ss:$0 sm:$0xff] }
  0xe8   : > { %592 = vst.msk [vmem:[%s2214_s20] sm:$0xf] %vm589_vm2, %v591_v40  ;;  %v1619_v44 = vpop.f32.mrf.mxu0  ;;  %v1555_v42 = vld [vmem:[%s2419_s4 + $0xb] ss:$0 sm:$0xff] }
  0xe9   : > { %v1627_v45 = vpop.f32.mrf.mxu1  ;;  %590 = vst.msk [vmem:[%s2225_s15] sm:$0xf] %vm589_vm2, %v588_v43 }
  0xea   : > { %v581_v48 = vpop.f32.mrf.mxu0 }
  0xeb   : > { %v654_v49 = vpop.f32.mrf.mxu1  ;;  %v582_v50 = vadd.f32 %v1468_v46, %v581_v48 }
  0xec   : > { %v655_v51 = vadd.f32 %v1477_v47, %v654_v49  ;;  %v1634_v52 = vpop.f32.mrf.mxu0 }
  0xed   : > { %v1642_v53 = vpop.f32.mrf.mxu1  ;;  %v593_v54 = vpack.c.bf16 %v582_v50, %v582_v50 }
  0xee   : > { %v790_v55 = vmul.f32 0.35355338, %v655_v51  ;;  %v584_v56 = vpop.f32.mrf.mxu0 }
  0xef   : > { %v657_v57 = vpop.f32.mrf.mxu1  ;;  %594 = vst.msk [vmem:[%s2230_s17] sm:$0xf] %vm589_vm2, %v593_v54 }
  0xf0   : > { %v791_v58 = vpack.c.bf16 %v790_v55, %v790_v55  ;;  %v1635_v59 = vpop.f32.mrf.mxu0 }
  0xf1   : > { %v1643_v60 = vpop.f32.mrf.mxu1 }
  0xf2   : > { %1499 = vst.msk [vmem:[%s2225_s15 + $0x4] sm:$0xf] %vm589_vm2, %v791_v58  ;;  %v719_v63 = vpop.f32.mrf.mxu0 }
  0xf3   : > { %v784_v0 = vpop.f32.mrf.mxu1  ;;  %v720_v1 = vadd.f32 %v1486_v61, %v719_v63 }
  0xf4   : > { %v785_v2 = vadd.f32 %v1495_v62, %v784_v0  ;;  %v1650_v3 = vpop.f32.mrf.mxu0 }
  0xf5   : > { %v1658_v4 = vpop.f32.mrf.mxu1  ;;  %v794_v5 = vpack.c.bf16 %v720_v1, %v720_v1 }
  0xf6   : > { %v797_v6 = vpack.c.bf16 %v785_v2, %v785_v2  ;;  %v722_v7 = vpop.f32.mrf.mxu0 }
  0xf7   : > { %v787_v8 = vpop.f32.mrf.mxu1  ;;  %1500 = vst.msk [vmem:[%s2214_s20 + $0x4] sm:$0xf] %vm589_vm2, %v794_v5 }
  0xf8   : > { %1501 = vst.msk [vmem:[%s2230_s17 + $0x4] sm:$0xf] %vm589_vm2, %v797_v6  ;;  %v1651_v9 = vpop.f32.mrf.mxu0 }
  0xf9   : > { %v1659_v10 = vpop.f32.mrf.mxu1 }
  0xfa   : > { %v859_v13 = vpop.f32.mrf.mxu0 }
  0xfb   : > { %v924_v14 = vpop.f32.mrf.mxu1  ;;  %v860_v15 = vadd.f32 %v1507_v11, %v859_v13 }
  0xfc   : > { %v925_v16 = vadd.f32 %v1516_v12, %v924_v14  ;;  %v1666_v17 = vpop.f32.mrf.mxu0 }
  0xfd   : > { %v1674_v18 = vpop.f32.mrf.mxu1  ;;  %v995_v19 = vmul.f32 0.35355338, %v860_v15 }
  0xfe   : > { %v999_v20 = vpack.c.bf16 %v925_v16, %v925_v16  ;;  %v862_v21 = vpop.f32.mrf.mxu0 }
  0xff   : > { %v927_v22 = vpop.f32.mrf.mxu1  ;;  %v996_v23 = vpack.c.bf16 %v995_v19, %v995_v19 }
 0x100   : > { %1530 = vst.msk [vmem:[%s2214_s20 + $0x8] sm:$0xf] %vm589_vm2, %v999_v20  ;;  %v1667_v24 = vpop.f32.mrf.mxu0 }
 0x101   : > { %v1675_v25 = vpop.f32.mrf.mxu1  ;;  %1529 = vst.msk [vmem:[%s2225_s15 + $0x8] sm:$0xf] %vm589_vm2, %v996_v23 }
 0x102   : > { %v989_v28 = vpop.f32.mrf.mxu0 }
 0x103   : > { %v1064_v29 = vpop.f32.mrf.mxu1  ;;  %v990_v30 = vadd.f32 %v1525_v26, %v989_v28 }
 0x104   : > { %v1065_v31 = vadd.f32 %v1537_v27, %v1064_v29  ;;  %v1682_v32 = vpop.f32.mrf.mxu0 }
 0x105   : > { %v1690_v33 = vpop.f32.mrf.mxu1  ;;  %v1002_v34 = vpack.c.bf16 %v990_v30, %v990_v30 }
 0x106   : > { %v1200_v35 = vmul.f32 0.35355338, %v1065_v31  ;;  %v992_v36 = vpop.f32.mrf.mxu0 }
 0x107   : > { %v1067_v37 = vpop.f32.mrf.mxu1  ;;  %1531 = vst.msk [vmem:[%s2230_s17 + $0x8] sm:$0xf] %vm589_vm2, %v1002_v34 }
 0x108   : > { %v1201_v38 = vpack.c.bf16 %v1200_v35, %v1200_v35  ;;  %v1683_v39 = vpop.f32.mrf.mxu0 }
 0x109   : > { %v1691_v40 = vpop.f32.mrf.mxu1 }
 0x10a   : > { %1559 = vst.msk [vmem:[%s2225_s15 + $0xc] sm:$0xf] %vm589_vm2, %v1201_v38  ;;  %v1129_v43 = vpop.f32.mrf.mxu0 }
 0x10b   : > { %v1194_v44 = vpop.f32.mrf.mxu1 }
 0x10c   : > { %1814 = shalt.err (!%p1811_p5)
}
 0x10d   : > { %s1815_s30 = scalar_lea.hbm %s2274_s8, 256  ;;  %s1819_s23 = scalar_lea.hbm %s2420_s5, 512 }
 0x10e   : > { %p1816_p6 = scmp.ne.s32.totalorder %s2274_s8, %s1815_s30  ;;  %p1820_p10 = scmp.lt.s32.totalorder %s2274_s8, %s2420_s5 }
 0x10f   : > { %p1821_p11 = scmp.lt.s32.totalorder %s1819_s23, %s1815_s30 }
 0x110   : > { %p1817_p7 = pnand %p1816_p6, %p2024_p4 }
 0x111   : > { %p1822_p12 = por %p1821_p11, %p1820_p10 }
 0x112   : > { %p1818_p9 = pneg %p1817_p7 }
 0x114   : > { %p1823_p13 = pnand %p1822_p12, %p1818_p9 }
 0x116   : > { %1826 = shalt.err (!%p1823_p13)
}
 0x117   : > { %s2425_s1 = smov 64   ;;  %s1939_s18 = smov 4   ;;  %v1130_v45 = vadd.f32 %v1546_v41, %v1129_v43  ;;  %v1195_v46 = vadd.f32 %v1555_v42, %v1194_v44  ;;  %v1698_v47 = vpop.f32.mrf.mxu0  ;;  %v1706_v48 = vpop.f32.mrf.mxu1 }
 0x118   : > { %1708 = dma.vmem_to_hbm [thread:$0]  (%p2024_p4), %s2266_s19, 256, %s2274_s8, %s2291_s12, %s2425_s1, %s2425_s1, %s1939_s18  }
 0x119   : > { %s1269_s16 = sshll.u32 %s2230_s17, 4  ;;  %s2434_s10 = sshll.u32 %s2214_s20, 4  ;;  %v1204_v49 = vpack.c.bf16 %v1130_v45, %v1130_v45  ;;  %v1207_v50 = vpack.c.bf16 %v1195_v46, %v1195_v46  ;;  %v1132_v51 = vpop.f32.mrf.mxu0  ;;  %v1197_v52 = vpop.f32.mrf.mxu1  ;;  %s2320_s10 = int_to_ptr.vmem [resolvable:$true] %s2434_s10  ;;  %s2328_s16 = int_to_ptr.vmem [resolvable:$true] %s1269_s16 }
 0x11a   : > { %s2326_s21 = scalar_lea.hbm %s2421_s6, %s2264_s22  ;;  %s2334_s12 = scalar_lea.hbm %s2422_s7, %s2264_s22 }
 0x11b   : > { %1560 = vst.msk [vmem:[%s2214_s20 + $0xc] sm:$0xf] %vm589_vm2, %v1204_v49  ;;  %1561 = vst.msk [vmem:[%s2230_s17 + $0xc] sm:$0xf] %vm589_vm2, %v1207_v50  ;;  %v1699_v53 = vpop.f32.mrf.mxu0  ;;  %v1707_v54 = vpop.f32.mrf.mxu1  ;;  %s1216_s23 = scalar_lea.sflag [#allocation5], %s2287_s0  ;;  %s1827_s27 = scalar_lea.vmem %s2320_s10, 256 }
 0x11c   : > { %p1828_p0 = scmp.ne.s32.totalorder %s2320_s10, %s1827_s27  ;;  %s1940_s30 = smov [#allocation4]  }
 0x11d   : > { %s1831_s15 = sshll.u32 %s1940_s30, 4  ;;  %s1832_s15 = int_to_ptr.vmem [resolvable:$false] %s1831_s15 }
 0x11e   : > { %p1829_p1 = pnand %p1828_p0, %p2024_p4  ;;  %s1833_s1 = scalar_lea.vmem %s1832_s15, 512 }
 0x11f   : > { %p1834_p3 = scmp.lt.s32.totalorder %s2320_s10, %s1832_s15  ;;  %p1835_p5 = scmp.lt.s32.totalorder %s1833_s1, %s1827_s27 }
 0x120   : > { %p1830_p2 = pneg %p1829_p1 }
 0x121   : > { %p1836_p6 = por %p1835_p5, %p1834_p3 }
 0x123   : > { %p1837_p7 = pnand %p1836_p6, %p1830_p2 }
 0x125   : > { %1840 = shalt.err (!%p1837_p7)
}
 0x126   : > { %s1841_s20 = scalar_lea.hbm %s2326_s21, 256  ;;  %s1845_s19 = scalar_lea.hbm %s2421_s6, 512 }
 0x127   : > { %p1842_p9 = scmp.ne.s32.totalorder %s2326_s21, %s1841_s20  ;;  %p1846_p12 = scmp.lt.s32.totalorder %s2326_s21, %s2421_s6 }
 0x128   : > { %p1847_p13 = scmp.lt.s32.totalorder %s1845_s19, %s1841_s20 }
 0x129   : > { %p1843_p10 = pnand %p1842_p9, %p2024_p4 }
 0x12a   : > { %p1848_p0 = por %p1847_p13, %p1846_p12 }
 0x12b   : > { %p1844_p11 = pneg %p1843_p10 }
 0x12d   : > { %p1849_p1 = pnand %p1848_p0, %p1844_p11 }
 0x12f   : > { %1852 = shalt.err (!%p1849_p1)
}
 0x130   : > { %s2435_s1 = smov 64   ;;  %s1853_s27 = scalar_lea.vmem %s2328_s16, 256 }
 0x131   : > { %1709 = dma.vmem_to_hbm [thread:$0]  (%p2024_p4), %s2320_s10, 256, %s2326_s21, %s1216_s23, %s2435_s1, %s2435_s1, %s1939_s18  }
 0x132   : > { %p1854_p2 = scmp.ne.s32.totalorder %s2328_s16, %s1853_s27  ;;  %s1941_s15 = smov [#allocation6]  }
 0x133   : > { %s1857_s20 = sshll.u32 %s1941_s15, 4  ;;  %s1858_s20 = int_to_ptr.vmem [resolvable:$false] %s1857_s20 }
 0x134   : > { %p1855_p3 = pnand %p1854_p2, %p2024_p4  ;;  %s1859_s17 = scalar_lea.vmem %s1858_s20, 512 }
 0x135   : > { %p1860_p6 = scmp.lt.s32.totalorder %s2328_s16, %s1858_s20  ;;  %p1861_p7 = scmp.lt.s32.totalorder %s1859_s17, %s1853_s27 }
 0x136   : > { %p1856_p5 = pneg %p1855_p3 }
 0x137   : > { %p1862_p9 = por %p1861_p7, %p1860_p6 }
 0x139   : > { %p1863_p10 = pnand %p1862_p9, %p1856_p5 }
 0x13b   : > { %1866 = shalt.err (!%p1863_p10)
}
 0x13c   : > { %s1867_s22 = scalar_lea.hbm %s2334_s12, 256  ;;  %s1871_s19 = scalar_lea.hbm %s2422_s7, 512 }
 0x13d   : > { %p1868_p11 = scmp.ne.s32.totalorder %s2334_s12, %s1867_s22  ;;  %p1872_p0 = scmp.lt.s32.totalorder %s2334_s12, %s2422_s7 }
 0x13e   : > { %p1873_p1 = scmp.lt.s32.totalorder %s1871_s19, %s1867_s22 }
 0x13f   : > { %p1869_p12 = pnand %p1868_p11, %p2024_p4 }
 0x140   : > { %p1874_p2 = por %p1873_p1, %p1872_p0 }
 0x141   : > { %p1870_p13 = pneg %p1869_p12 }
 0x143   : > { %p1875_p3 = pnand %p1874_p2, %p1870_p13 }
 0x145   : > { %1878 = shalt.err (!%p1875_p3)
}
 0x146   : > { %1710 = dma.vmem_to_hbm [thread:$0]  (%p2024_p4), %s2328_s16, 256, %s2334_s12, %s1216_s23, %s2435_s1, %s2435_s1, %s1939_s18  }
 0x147 PF: > { %p1724_p5 = scmp.ge.s32.totalorder %s1933_s29, 2  ;;  %s1284_s27 = sand.u32 1, %s1913_s24  }
 0x148   : > { %s1285_s15 = scalar_lea.sflag [#allocation3], %s1284_s27 }
 0x149   : > { %p1715_p6 = pnand %p1724_p5, %p2033_p8 }
 0x14b   : > { %p1716_p7 = pneg %p1715_p6 }
 0x14d   : > { %1904 = dma.done.wait (%p1716_p7), %s1285_s15, 256  }
 0x14e   : > { %1906 = vsyncadd (%p1716_p7), %s1285_s15, 4294967040  ;;  %s2436_s11 = sadd.s32 4294967294, %s1933_s29  }
 0x14f   : > { %s1293_s20 = sand.u32 1, %s2436_s11  }
 0x150   : > { %s1294_s17 = scalar_lea.sflag [#allocation5], %s1293_s20 }
 0x151   : > { %1908 = dma.done.wait (%p1716_p7), %s1294_s17, 512  }
 0x152   : > { %1910 = vsyncadd (%p1716_p7), %s1294_s17, 4294966784  ;;  %s24_s29 = sadd.s32 1, %s1933_s29   ;;  %s2437_s24 = smov %s1917_s25 }
 0x153   : > { %p21_p4 = scmp.ge.s32.totalorder %s24_s29, 4   ;;  %s2438_s25 = smov %s1921_s26 }
 0x154   : > { %s2439_s26 = smov %s2039_s14  ;;  %s2440_s27 = smov %s1929_s28 }
 0x155   : > { %s2441_s28 = smov %s2443_s9  ;;  %23 = sbr.rel (!%p21_p4) target bundleno = 9 (0x9), region = 144 }
 0x15a   :  { %1308 = vsyncpa [#allocation3], 1 }
 0x15b   :  { %1310 = vsyncpa [#allocation3 + $0x1], 1 }
 0x15c   :  { %1311 = vsyncpa [#allocation5], 1 }
 0x15d   :  { %1313 = vsyncpa [#allocation5 + $0x1], 1 }

// kernel: tpu_custom_call.1
= control target key start
LH: loop header
LB: loop body
LE: loop exit
PB: predicated region body
PF: predicated region fallthrough
CT: control target
= control target key end

     0   :  { %s2415_s0 = inlined_call_operand.vmem [shape: f32[2,8,32], index: 0, kind: input, shape index: {}]   ;;  %s2416_s1 = inlined_call_operand.vmem [shape: f32[2,8,32], index: 1, kind: input, shape index: {}]   ;;  %s2417_s2 = inlined_call_operand.vmem [shape: f32[2,8,32], index: 2, kind: input, shape index: {}]   ;;  %s2418_s3 = inlined_call_operand.vmem [shape: bf16[3,4,32,8], index: 3, kind: input, shape index: {}]   ;;  %s2419_s4 = inlined_call_operand.vmem [shape: f32[3,4,1,8], index: 4, kind: input, shape index: {}]   ;;  %s2420_s5 = inlined_call_operand.hbm [shape: bf16[2,4,8,8], index: 5, kind: output, shape index: {0}]   ;;  %s2421_s6 = inlined_call_operand.hbm [shape: bf16[2,4,8,8], index: 6, kind: output, shape index: {1}]   ;;  %s2422_s7 = inlined_call_operand.hbm [shape: bf16[2,4,8,8], index: 7, kind: output, shape index: {2}]  }
   0x1   :  { %2427 = sst [smem:[#allocation9_spill]] %s2415_s0 }
   0x2   :  { %2428 = sst [smem:[#allocation10_spill]] %s2416_s1 }
   0x3   :  { %13 = vsyncpa [#allocation3], 0 }
   0x4   :  { %15 = vsyncpa [#allocation3 + $0x1], 0 }
   0x5   :  { %16 = vsyncpa [#allocation5], 0 }
   0x6   :  { %18 = vsyncpa [#allocation5 + $0x1], 0  ;;  %s1982_s24 = smov 0   ;;  %s1984_s25 = smov 0  }
   0x7   :  { %s1986_s26 = smov 0   ;;  %s1988_s27 = smov 0  }
   0x8   :  { %s1990_s28 = smov 0   ;;  %s1992_s29 = smov 0  }
   0x9 LB: > { %s1439_s30 = sadd.s32 4294967295, %s1933_s29   ;;  %s2423_s8 = sadd.s32 4294967294, %s1933_s29   ;;  %s1933_s29 = sphi %s1992_s29, %s24_s29   ;;  %s1929_s28 = sphi %s1990_s28, %s2441_s28   ;;  %s1925_s27 = sphi %s1988_s27, %s2440_s27   ;;  %s1921_s26 = sphi %s1986_s26, %s2439_s26   ;;  %s1917_s25 = sphi %s1984_s25, %s2438_s25   ;;  %s1913_s24 = sphi %s1982_s24, %s2437_s24  }
   0xa   : > { %s36_s9 = sadd.s32 1, %s1929_s28  ;;  %s171_s10 = sadd.s32 1, %s1921_s26 }
   0xb   : > { %p38_p0 = scmp.ge.s32.totalorder %s36_s9, 2  ;;  %p181_p1 = scmp.ne.s32.totalorder %s1921_s26, %s1917_s25 }
   0xc   : > { %p182_p2 = scmp.eq.s32.totalorder %s1439_s30, 1  ;;  %p187_p3 = scmp.ne.s32.totalorder %s1917_s25, %s1913_s24 }
   0xd   : > { %s2443_s9 = smov (%p38_p0, %s36_s9), 0  ;;  %p188_p5 = scmp.eq.s32.totalorder %s2423_s8, 1 }
   0xe   : > { %p2024_p4 = por %p182_p2, %p181_p1  ;;  %s166_s12 = ssub.s32 %s1929_s28, %s2443_s9 }
   0xf   : > { %p1443_p6 = scmp.ge.s32.totalorder %s1933_s29, 1  ;;  %p169_p7 = scmp.eq.s32.totalorder %s166_s12, 0 }
  0x10   : > { %p2033_p8 = por %p188_p5, %p187_p3  ;;  %p298_p9 = scmp.lt.s32.totalorder %s1933_s29, 3 }
  0x11   : > { %s2039_s14 = scalar_select %p169_p7, %s1921_s26, %s171_s10  }
  0x12   : > { %p299_p10 = pnand %p1443_p6, %p298_p9 }
  0x13   : > { %p356_p11 = scmp.lt.s32.totalorder (!%p299_p10), %s1925_s27, 1  ;;  %s2431_s0 = sld [smem:[#allocation9_spill]] (!%p299_p10) }
  0x14   : > { %302 = sbr.rel (%p299_p10) target bundleno = 327 (0x147), region = 40  ;;  %s2432_s1 = sld [smem:[#allocation10_spill]] (!%p299_p10) }
  0x15   : > { %s2424_s16 = sand.u32 (!%p299_p10), 1, %s1917_s25   ;;  %s2264_s22 = sshll.u32 (!%p299_p10), %s1925_s27, 8 }
  0x16   : > { %s2211_s19 = sshll.u32 (!%p299_p10), %s2424_s16, 4  ;;  %s2274_s8 = scalar_lea.hbm (!%p299_p10), %s2420_s5, %s2264_s22 }
  0x17   : > { %s2214_s20 = scalar_lea.vmem (!%p299_p10), [#allocation4], %s2211_s19  ;;  %s2230_s17 = scalar_lea.vmem (!%p299_p10), [#allocation6], %s2211_s19 }
  0x19   : > { %v1777_v0 = vld [vmem:[%s2418_s3 + $0x8] sm:$0xff]   ;;  %v1935_v1 = vmov 0.0   ;;  %v1779_v3 = vld [vmem:[%s2418_s3] sm:$0xff]   ;;  %vm1936_vm0 = vmmov 0   ;;  %s357_s23 = scalar_select %p356_p11, %s1925_s27, 1  ;;  %v1782_v6 = vld [vmem:[%s2418_s3 + $0x18] sm:$0xff]  }
  0x1a   : > { %1612 = vmatprep.subr.bf16.mxu0 %v1935_v1  ;;  %1620 = vmatprep.subr.bf16.mxu1 %v1935_v1  ;;  %v1778_v2 = vld [vmem:[%s2418_s3 + $0x48] sm:$0xff]   ;;  %v1780_v4 = vld [vmem:[%s2418_s3 + $0x40] sm:$0xff]   ;;  %vm407_vm1 = vcmask 261120   ;;  %v1784_v12 = vld [vmem:[%s2418_s3 + $0x10] sm:$0xff]   ;;  %vm589_vm2 = vcmask 60416   ;;  %s1937_s27 = smov [#allocation2]  }
  0x1b   : > { %1613 = vmatpush3.bf16.msra.mxu0 %v1777_v0  ;;  %1616 = vmatprep.mubr.msk.bf16.mxu0 %vm1936_vm0, %v1935_v1  ;;  %s1447_s10 = sshll.u32 %s357_s23, 3  ;;  %v1781_v5 = vld [vmem:[%s2418_s3 + $0x88] sm:$0xff]   ;;  %v1783_v11 = vld [vmem:[%s2418_s3 + $0x80] sm:$0xff]   ;;  %v1785_v15 = vld [vmem:[%s2418_s3 + $0x58] sm:$0xff]   ;;  %s2433_s23 = sand.u32 1, %s1917_s25  }
  0x1c   : > { %1621 = vmatpush3.bf16.msra.mxu1 %v1778_v2  ;;  %1614 = vmatprep.subr.bf16.mxu0 %v1935_v1  ;;  %s362_s18 = scalar_lea.vmem %s2431_s0, %s1447_s10  ;;  %s369_s21 = scalar_lea.vmem %s2432_s1, %s1447_s10  ;;  %v1786_v16 = vld [vmem:[%s2418_s3 + $0x98] sm:$0xff]   ;;  %v1787_v17 = vld [vmem:[%s2418_s3 + $0x50] sm:$0xff]   ;;  %v1789_v19 = vld [vmem:[%s2418_s3 + $0x28] sm:$0xff]  }
  0x1d   : > { %1622 = vmatprep.subr.bf16.mxu1 %v1935_v1  ;;  %1624 = vmatprep.mubr.msk.bf16.mxu1 %vm1936_vm0, %v1935_v1  ;;  %v378_v7 = vld [vmem:[%s362_s18] sm:$0xff]  ;;  %s376_s15 = scalar_lea.vmem %s2417_s2, %s1447_s10  ;;  %v1788_v18 = vld [vmem:[%s2418_s3 + $0x90] sm:$0xff]   ;;  %v1790_v20 = vld [vmem:[%s2418_s3 + $0x68] sm:$0xff]   ;;  %s2287_s0 = sand.u32 1, %s1439_s30  }
  0x1e   : > { %v380_v8 = vld [vmem:[%s369_s21] sm:$0xff]  ;;  %v2077_v9 = vpack.c.bf16 %v378_v7, %v378_v7  ;;  %v1793_v23 = vld [vmem:[%s2418_s3 + $0xa8] sm:$0xff]   ;;  %v1794_v24 = vld [vmem:[%s2418_s3 + $0x38] sm:$0xff]   ;;  %s2291_s12 = scalar_lea.sflag [#allocation3], %s2433_s23  ;;  %s1805_s18 = sshll.u32 %s1937_s27, 4  ;;  %s1806_s18 = int_to_ptr.vmem [resolvable:$false] %s1805_s18 }
  0x1f   : > { %1615 = vmatpush3.bf16.msra.mxu0 %v1779_v3  ;;  %v2079_v10 = vpack.c.bf16 %v380_v8, %v380_v8  ;;  %v382_v13 = vld [vmem:[%s376_s15] sm:$0xff]  ;;  %v1796_v26 = vld [vmem:[%s2418_s3 + $0x30] sm:$0xff]   ;;  %v1797_v27 = vld [vmem:[%s2418_s3 + $0x78] sm:$0xff]   ;;  %s2225_s15 = scalar_lea.vmem [#allocation2], %s2211_s19  ;;  %s1807_s10 = scalar_lea.vmem %s1806_s18, 512 }
  0x20   : > { %1623 = vmatpush3.bf16.msra.mxu1 %v1780_v4  ;;  %1628 = vmatprep.subr.bf16.mxu0 %v1935_v1  ;;  %v2100_v14 = vpack.c.bf16 %v382_v13, %v382_v13  ;;  %v1791_v21 = vld [vmem:[%s2418_s3 + $0x20] sm:$0xff]   ;;  %v1798_v28 = vld [vmem:[%s2418_s3 + $0xb8] sm:$0xff]   ;;  %v1799_v29 = vld [vmem:[%s2418_s3 + $0x70] sm:$0xff]   ;;  %s1235_s19 = sshll.u32 %s2225_s15, 4  ;;  %s2266_s19 = int_to_ptr.vmem [resolvable:$true] %s1235_s19 }
  0x21   : > { %1636 = vmatprep.subr.bf16.mxu1 %v1935_v1  ;;  %v1792_v22 = vld [vmem:[%s2418_s3 + $0x60] sm:$0xff]   ;;  %v1800_v30 = vld [vmem:[%s2418_s3 + $0xb0] sm:$0xff]   ;;  %v1468_v46 = vld [vmem:[%s2419_s4 + $0x8] ss:$0 sm:$0xff]  ;;  %s1801_s1 = scalar_lea.vmem %s2266_s19, 256  ;;  %p1808_p1 = scmp.lt.s32.totalorder %s2266_s19, %s1806_s18 }
  0x22   : > { %1617 = vmatmul.mubr.msk.bf16.vlgmr.msra.gmra.mxu0 %vm407_vm1, %v2077_v9  ;;  %v1795_v25 = vld [vmem:[%s2418_s3 + $0xa0] sm:$0xff]   ;;  %v1495_v62 = vld [vmem:[%s2419_s4 + $0x9] ss:$0 sm:$0xff]  ;;  %p1802_p12 = scmp.ne.s32.totalorder %s2266_s19, %s1801_s1  ;;  %p1809_p2 = scmp.lt.s32.totalorder %s1807_s10, %s1801_s1 }
  0x23   : > { %1625 = vmatmul.mubr.msk.bf16.vlgmr.msra.gmra.mxu1 %vm407_vm1, %v2079_v10  ;;  %1629 = vmatpush3.bf16.msra.mxu0 %v1781_v5  ;;  %v1450_v31 = vld [vmem:[%s2419_s4] ss:$0 sm:$0xff]  ;;  %v1459_v32 = vld [vmem:[%s2419_s4 + $0x4] ss:$0 sm:$0xff]  ;;  %v1477_v47 = vld [vmem:[%s2419_s4 + $0x1] ss:$0 sm:$0xff] }
  0x24   : > { %1637 = vmatpush3.bf16.msra.mxu1 %v1782_v6  ;;  %1630 = vmatprep.subr.bf16.mxu0 %v1935_v1  ;;  %v1486_v61 = vld [vmem:[%s2419_s4 + $0x5] ss:$0 sm:$0xff]  ;;  %p1803_p13 = pnand %p1802_p12, %p2024_p4  ;;  %p1810_p3 = por %p1809_p2, %p1808_p1 }
  0x25   : > { %1638 = vmatprep.subr.bf16.mxu1 %v1935_v1  ;;  %1632 = vmatprep.mubr.msk.bf16.mxu0 %vm1936_vm0, %v1935_v1 }
  0x26   : > { %1640 = vmatprep.mubr.msk.bf16.mxu1 %vm1936_vm0, %v1935_v1  ;;  %p1804_p0 = pneg %p1803_p13 }
  0x27   : > { %1631 = vmatpush3.bf16.msra.mxu0 %v1783_v11  ;;  %v1507_v11 = vld [vmem:[%s2419_s4 + $0x2] ss:$0 sm:$0xff] }
  0x28   : > { %1639 = vmatpush3.bf16.msra.mxu1 %v1784_v12  ;;  %1644 = vmatprep.subr.bf16.mxu0 %v1935_v1  ;;  %v1516_v12 = vld [vmem:[%s2419_s4 + $0x6] ss:$0 sm:$0xff]  ;;  %p1811_p5 = pnand %p1810_p3, %p1804_p0 }
  0x29   : > { %1652 = vmatprep.subr.bf16.mxu1 %v1935_v1 }
  0x2a   : > { %1633 = vmatmul.mubr.msk.bf16.vlgmr.msra.gmra.mxu0 %vm407_vm1, %v2100_v14 }
  0x2b   : > { %1641 = vmatmul.mubr.msk.bf16.vlgmr.msra.gmra.mxu1 %vm407_vm1, %v2077_v9  ;;  %1645 = vmatpush3.bf16.msra.mxu0 %v1785_v15 }
  0x2c   : > { %1653 = vmatpush3.bf16.msra.mxu1 %v1786_v16  ;;  %1646 = vmatprep.subr.bf16.mxu0 %v1935_v1 }
  0x2d   : > { %1654 = vmatprep.subr.bf16.mxu1 %v1935_v1  ;;  %1648 = vmatprep.mubr.msk.bf16.mxu0 %vm1936_vm0, %v1935_v1 }
  0x2e   : > { %1656 = vmatprep.mubr.msk.bf16.mxu1 %vm1936_vm0, %v1935_v1 }
  0x2f   : > { %1647 = vmatpush3.bf16.msra.mxu0 %v1787_v17 }
  0x30   : > { %1655 = vmatpush3.bf16.msra.mxu1 %v1788_v18  ;;  %1660 = vmatprep.subr.bf16.mxu0 %v1935_v1 }
  0x31   : > { %1668 = vmatprep.subr.bf16.mxu1 %v1935_v1 }
  0x32   : > { %1649 = vmatmul.mubr.msk.bf16.vlgmr.msra.gmra.mxu0 %vm407_vm1, %v2079_v10 }
  0x33   : > { %1657 = vmatmul.mubr.msk.bf16.vlgmr.msra.gmra.mxu1 %vm407_vm1, %v2100_v14  ;;  %1661 = vmatpush3.bf16.msra.mxu0 %v1789_v19 }
  0x34   : > { %1669 = vmatpush3.bf16.msra.mxu1 %v1790_v20  ;;  %1662 = vmatprep.subr.bf16.mxu0 %v1935_v1 }
  0x35   : > { %1670 = vmatprep.subr.bf16.mxu1 %v1935_v1  ;;  %1664 = vmatprep.mubr.msk.bf16.mxu0 %vm1936_vm0, %v1935_v1 }
  0x36   : > { %1672 = vmatprep.mubr.msk.bf16.mxu1 %vm1936_vm0, %v1935_v1 }
  0x37   : > { %1663 = vmatpush3.bf16.msra.mxu0 %v1791_v21 }
  0x38   : > { %1671 = vmatpush3.bf16.msra.mxu1 %v1792_v22  ;;  %1676 = vmatprep.subr.bf16.mxu0 %v1935_v1 }
  0x39   : > { %1684 = vmatprep.subr.bf16.mxu1 %v1935_v1 }
  0x3a   : > { %1665 = vmatmul.mubr.msk.bf16.vlgmr.msra.gmra.mxu0 %vm407_vm1, %v2077_v9 }
  0x3b   : > { %1673 = vmatmul.mubr.msk.bf16.vlgmr.msra.gmra.mxu1 %vm407_vm1, %v2079_v10  ;;  %1677 = vmatpush3.bf16.msra.mxu0 %v1793_v23 }
  0x3c   : > { %1685 = vmatpush3.bf16.msra.mxu1 %v1794_v24  ;;  %1678 = vmatprep.subr.bf16.mxu0 %v1935_v1 }
  0x3d   : > { %1686 = vmatprep.subr.bf16.mxu1 %v1935_v1  ;;  %1680 = vmatprep.mubr.msk.bf16.mxu0 %vm1936_vm0, %v1935_v1 }
  0x3e   : > { %1688 = vmatprep.mubr.msk.bf16.mxu1 %vm1936_vm0, %v1935_v1 }
  0x3f   : > { %1679 = vmatpush3.bf16.msra.mxu0 %v1795_v25 }
  0x40   : > { %1687 = vmatpush3.bf16.msra.mxu1 %v1796_v26  ;;  %1692 = vmatprep.subr.bf16.mxu0 %v1935_v1  ;;  %v1525_v26 = vld [vmem:[%s2419_s4 + $0xa] ss:$0 sm:$0xff] }
  0x41   : > { %1700 = vmatprep.subr.bf16.mxu1 %v1935_v1 }
  0x42   : > { %1681 = vmatmul.mubr.msk.bf16.vlgmr.msra.gmra.mxu0 %vm407_vm1, %v2100_v14 }
  0x43   : > { %1689 = vmatmul.mubr.msk.bf16.vlgmr.msra.gmra.mxu1 %vm407_vm1, %v2077_v9  ;;  %1693 = vmatpush3.bf16.msra.mxu0 %v1797_v27  ;;  %v1537_v27 = vld [vmem:[%s2419_s4 + $0x3] ss:$0 sm:$0xff] }
  0x44   : > { %1701 = vmatpush3.bf16.msra.mxu1 %v1798_v28  ;;  %1694 = vmatprep.subr.bf16.mxu0 %v1935_v1 }
  0x45   : > { %1702 = vmatprep.subr.bf16.mxu1 %v1935_v1  ;;  %1696 = vmatprep.mubr.msk.bf16.mxu0 %vm1936_vm0, %v1935_v1 }
  0x46   : > { %1704 = vmatprep.mubr.msk.bf16.mxu1 %vm1936_vm0, %v1935_v1 }
  0x47   : > { %1695 = vmatpush3.bf16.msra.mxu0 %v1799_v29 }
  0x48   : > { %1703 = vmatpush3.bf16.msra.mxu1 %v1800_v30 }
  0x4a   : > { %1697 = vmatmul.mubr.msk.bf16.vlgmr.msra.gmra.mxu0 %vm407_vm1, %v2079_v10 }
  0x4b   : > { %1705 = vmatmul.mubr.msk.bf16.vlgmr.msra.gmra.mxu1 %vm407_vm1, %v2100_v14 }
  0xe2   : > { %v445_v33 = vpop.f32.mrf.mxu0 }
  0xe3   : > { %v513_v34 = vpop.f32.mrf.mxu1  ;;  %v446_v35 = vadd.f32 %v1450_v31, %v445_v33 }
  0xe4   : > { %v514_v36 = vadd.f32 %v1459_v32, %v513_v34  ;;  %v1618_v37 = vpop.f32.mrf.mxu0 }
  0xe5   : > { %v1626_v38 = vpop.f32.mrf.mxu1  ;;  %v587_v39 = vmul.f32 0.35355338, %v446_v35 }
  0xe6   : > { %v591_v40 = vpack.c.bf16 %v514_v36, %v514_v36  ;;  %v448_v41 = vpop.f32.mrf.mxu0 }
  0xe7   : > { %v516_v42 = vpop.f32.mrf.mxu1  ;;  %v588_v43 = vpack.c.bf16 %v587_v39, %v587_v39  ;;  %v1546_v41 = vld [vmem:[%s2419_s4 + $0x7] ss:$0 sm:$0xff] }
  0xe8   : > { %592 = vst.msk [vmem:[%s2214_s20] sm:$0xf] %vm589_vm2, %v591_v40  ;;  %v1619_v44 = vpop.f32.mrf.mxu0  ;;  %v1555_v42 = vld [vmem:[%s2419_s4 + $0xb] ss:$0 sm:$0xff] }
  0xe9   : > { %v1627_v45 = vpop.f32.mrf.mxu1  ;;  %590 = vst.msk [vmem:[%s2225_s15] sm:$0xf] %vm589_vm2, %v588_v43 }
  0xea   : > { %v581_v48 = vpop.f32.mrf.mxu0 }
  0xeb   : > { %v654_v49 = vpop.f32.mrf.mxu1  ;;  %v582_v50 = vadd.f32 %v1468_v46, %v581_v48 }
  0xec   : > { %v655_v51 = vadd.f32 %v1477_v47, %v654_v49  ;;  %v1634_v52 = vpop.f32.mrf.mxu0 }
  0xed   : > { %v1642_v53 = vpop.f32.mrf.mxu1  ;;  %v593_v54 = vpack.c.bf16 %v582_v50, %v582_v50 }
  0xee   : > { %v790_v55 = vmul.f32 0.35355338, %v655_v51  ;;  %v584_v56 = vpop.f32.mrf.mxu0 }
  0xef   : > { %v657_v57 = vpop.f32.mrf.mxu1  ;;  %594 = vst.msk [vmem:[%s2230_s17] sm:$0xf] %vm589_vm2, %v593_v54 }
  0xf0   : > { %v791_v58 = vpack.c.bf16 %v790_v55, %v790_v55  ;;  %v1635_v59 = vpop.f32.mrf.mxu0 }
  0xf1   : > { %v1643_v60 = vpop.f32.mrf.mxu1 }
  0xf2   : > { %1499 = vst.msk [vmem:[%s2225_s15 + $0x4] sm:$0xf] %vm589_vm2, %v791_v58  ;;  %v719_v63 = vpop.f32.mrf.mxu0 }
  0xf3   : > { %v784_v0 = vpop.f32.mrf.mxu1  ;;  %v720_v1 = vadd.f32 %v1486_v61, %v719_v63 }
  0xf4   : > { %v785_v2 = vadd.f32 %v1495_v62, %v784_v0  ;;  %v1650_v3 = vpop.f32.mrf.mxu0 }
  0xf5   : > { %v1658_v4 = vpop.f32.mrf.mxu1  ;;  %v794_v5 = vpack.c.bf16 %v720_v1, %v720_v1 }
  0xf6   : > { %v797_v6 = vpack.c.bf16 %v785_v2, %v785_v2  ;;  %v722_v7 = vpop.f32.mrf.mxu0 }
  0xf7   : > { %v787_v8 = vpop.f32.mrf.mxu1  ;;  %1500 = vst.msk [vmem:[%s2214_s20 + $0x4] sm:$0xf] %vm589_vm2, %v794_v5 }
  0xf8   : > { %1501 = vst.msk [vmem:[%s2230_s17 + $0x4] sm:$0xf] %vm589_vm2, %v797_v6  ;;  %v1651_v9 = vpop.f32.mrf.mxu0 }
  0xf9   : > { %v1659_v10 = vpop.f32.mrf.mxu1 }
  0xfa   : > { %v859_v13 = vpop.f32.mrf.mxu0 }
  0xfb   : > { %v924_v14 = vpop.f32.mrf.mxu1  ;;  %v860_v15 = vadd.f32 %v1507_v11, %v859_v13 }
  0xfc   : > { %v925_v16 = vadd.f32 %v1516_v12, %v924_v14  ;;  %v1666_v17 = vpop.f32.mrf.mxu0 }
  0xfd   : > { %v1674_v18 = vpop.f32.mrf.mxu1  ;;  %v995_v19 = vmul.f32 0.35355338, %v860_v15 }
  0xfe   : > { %v999_v20 = vpack.c.bf16 %v925_v16, %v925_v16  ;;  %v862_v21 = vpop.f32.mrf.mxu0 }
  0xff   : > { %v927_v22 = vpop.f32.mrf.mxu1  ;;  %v996_v23 = vpack.c.bf16 %v995_v19, %v995_v19 }
 0x100   : > { %1530 = vst.msk [vmem:[%s2214_s20 + $0x8] sm:$0xf] %vm589_vm2, %v999_v20  ;;  %v1667_v24 = vpop.f32.mrf.mxu0 }
 0x101   : > { %v1675_v25 = vpop.f32.mrf.mxu1  ;;  %1529 = vst.msk [vmem:[%s2225_s15 + $0x8] sm:$0xf] %vm589_vm2, %v996_v23 }
 0x102   : > { %v989_v28 = vpop.f32.mrf.mxu0 }
 0x103   : > { %v1064_v29 = vpop.f32.mrf.mxu1  ;;  %v990_v30 = vadd.f32 %v1525_v26, %v989_v28 }
 0x104   : > { %v1065_v31 = vadd.f32 %v1537_v27, %v1064_v29  ;;  %v1682_v32 = vpop.f32.mrf.mxu0 }
 0x105   : > { %v1690_v33 = vpop.f32.mrf.mxu1  ;;  %v1002_v34 = vpack.c.bf16 %v990_v30, %v990_v30 }
 0x106   : > { %v1200_v35 = vmul.f32 0.35355338, %v1065_v31  ;;  %v992_v36 = vpop.f32.mrf.mxu0 }
 0x107   : > { %v1067_v37 = vpop.f32.mrf.mxu1  ;;  %1531 = vst.msk [vmem:[%s2230_s17 + $0x8] sm:$0xf] %vm589_vm2, %v1002_v34 }
 0x108   : > { %v1201_v38 = vpack.c.bf16 %v1200_v35, %v1200_v35  ;;  %v1683_v39 = vpop.f32.mrf.mxu0 }
 0x109   : > { %v1691_v40 = vpop.f32.mrf.mxu1 }
 0x10a   : > { %1559 = vst.msk [vmem:[%s2225_s15 + $0xc] sm:$0xf] %vm589_vm2, %v1201_v38  ;;  %v1129_v43 = vpop.f32.mrf.mxu0 }
 0x10b   : > { %v1194_v44 = vpop.f32.mrf.mxu1 }
 0x10c   : > { %1814 = shalt.err (!%p1811_p5)
}
 0x10d   : > { %s1815_s30 = scalar_lea.hbm %s2274_s8, 256  ;;  %s1819_s23 = scalar_lea.hbm %s2420_s5, 512 }
 0x10e   : > { %p1816_p6 = scmp.ne.s32.totalorder %s2274_s8, %s1815_s30  ;;  %p1820_p10 = scmp.lt.s32.totalorder %s2274_s8, %s2420_s5 }
 0x10f   : > { %p1821_p11 = scmp.lt.s32.totalorder %s1819_s23, %s1815_s30 }
 0x110   : > { %p1817_p7 = pnand %p1816_p6, %p2024_p4 }
 0x111   : > { %p1822_p12 = por %p1821_p11, %p1820_p10 }
 0x112   : > { %p1818_p9 = pneg %p1817_p7 }
 0x114   : > { %p1823_p13 = pnand %p1822_p12, %p1818_p9 }
 0x116   : > { %1826 = shalt.err (!%p1823_p13)
}
 0x117   : > { %s2425_s1 = smov 64   ;;  %s1939_s18 = smov 4   ;;  %v1130_v45 = vadd.f32 %v1546_v41, %v1129_v43  ;;  %v1195_v46 = vadd.f32 %v1555_v42, %v1194_v44  ;;  %v1698_v47 = vpop.f32.mrf.mxu0  ;;  %v1706_v48 = vpop.f32.mrf.mxu1 }
 0x118   : > { %1708 = dma.vmem_to_hbm [thread:$0]  (%p2024_p4), %s2266_s19, 256, %s2274_s8, %s2291_s12, %s2425_s1, %s2425_s1, %s1939_s18  }
 0x119   : > { %s1269_s16 = sshll.u32 %s2230_s17, 4  ;;  %s2434_s10 = sshll.u32 %s2214_s20, 4  ;;  %v1204_v49 = vpack.c.bf16 %v1130_v45, %v1130_v45  ;;  %v1207_v50 = vpack.c.bf16 %v1195_v46, %v1195_v46  ;;  %v1132_v51 = vpop.f32.mrf.mxu0  ;;  %v1197_v52 = vpop.f32.mrf.mxu1  ;;  %s2320_s10 = int_to_ptr.vmem [resolvable:$true] %s2434_s10  ;;  %s2328_s16 = int_to_ptr.vmem [resolvable:$true] %s1269_s16 }
 0x11a   : > { %s2326_s21 = scalar_lea.hbm %s2421_s6, %s2264_s22  ;;  %s2334_s12 = scalar_lea.hbm %s2422_s7, %s2264_s22 }
 0x11b   : > { %1560 = vst.msk [vmem:[%s2214_s20 + $0xc] sm:$0xf] %vm589_vm2, %v1204_v49  ;;  %1561 = vst.msk [vmem:[%s2230_s17 + $0xc] sm:$0xf] %vm589_vm2, %v1207_v50  ;;  %v1699_v53 = vpop.f32.mrf.mxu0  ;;  %v1707_v54 = vpop.f32.mrf.mxu1  ;;  %s1216_s23 = scalar_lea.sflag [#allocation5], %s2287_s0  ;;  %s1827_s27 = scalar_lea.vmem %s2320_s10, 256 }
 0x11c   : > { %p1828_p0 = scmp.ne.s32.totalorder %s2320_s10, %s1827_s27  ;;  %s1940_s30 = smov [#allocation4]  }
 0x11d   : > { %s1831_s15 = sshll.u32 %s1940_s30, 4  ;;  %s1832_s15 = int_to_ptr.vmem [resolvable:$false] %s1831_s15 }
 0x11e   : > { %p1829_p1 = pnand %p1828_p0, %p2024_p4  ;;  %s1833_s1 = scalar_lea.vmem %s1832_s15, 512 }
 0x11f   : > { %p1834_p3 = scmp.lt.s32.totalorder %s2320_s10, %s1832_s15  ;;  %p1835_p5 = scmp.lt.s32.totalorder %s1833_s1, %s1827_s27 }
 0x120   : > { %p1830_p2 = pneg %p1829_p1 }
 0x121   : > { %p1836_p6 = por %p1835_p5, %p1834_p3 }
 0x123   : > { %p1837_p7 = pnand %p1836_p6, %p1830_p2 }
 0x125   : > { %1840 = shalt.err (!%p1837_p7)
}
 0x126   : > { %s1841_s20 = scalar_lea.hbm %s2326_s21, 256  ;;  %s1845_s19 = scalar_lea.hbm %s2421_s6, 512 }
 0x127   : > { %p1842_p9 = scmp.ne.s32.totalorder %s2326_s21, %s1841_s20  ;;  %p1846_p12 = scmp.lt.s32.totalorder %s2326_s21, %s2421_s6 }
 0x128   : > { %p1847_p13 = scmp.lt.s32.totalorder %s1845_s19, %s1841_s20 }
 0x129   : > { %p1843_p10 = pnand %p1842_p9, %p2024_p4 }
 0x12a   : > { %p1848_p0 = por %p1847_p13, %p1846_p12 }
 0x12b   : > { %p1844_p11 = pneg %p1843_p10 }
 0x12d   : > { %p1849_p1 = pnand %p1848_p0, %p1844_p11 }
 0x12f   : > { %1852 = shalt.err (!%p1849_p1)
}
 0x130   : > { %s2435_s1 = smov 64   ;;  %s1853_s27 = scalar_lea.vmem %s2328_s16, 256 }
 0x131   : > { %1709 = dma.vmem_to_hbm [thread:$0]  (%p2024_p4), %s2320_s10, 256, %s2326_s21, %s1216_s23, %s2435_s1, %s2435_s1, %s1939_s18  }
 0x132   : > { %p1854_p2 = scmp.ne.s32.totalorder %s2328_s16, %s1853_s27  ;;  %s1941_s15 = smov [#allocation6]  }
 0x133   : > { %s1857_s20 = sshll.u32 %s1941_s15, 4  ;;  %s1858_s20 = int_to_ptr.vmem [resolvable:$false] %s1857_s20 }
 0x134   : > { %p1855_p3 = pnand %p1854_p2, %p2024_p4  ;;  %s1859_s17 = scalar_lea.vmem %s1858_s20, 512 }
 0x135   : > { %p1860_p6 = scmp.lt.s32.totalorder %s2328_s16, %s1858_s20  ;;  %p1861_p7 = scmp.lt.s32.totalorder %s1859_s17, %s1853_s27 }
 0x136   : > { %p1856_p5 = pneg %p1855_p3 }
 0x137   : > { %p1862_p9 = por %p1861_p7, %p1860_p6 }
 0x139   : > { %p1863_p10 = pnand %p1862_p9, %p1856_p5 }
 0x13b   : > { %1866 = shalt.err (!%p1863_p10)
}
 0x13c   : > { %s1867_s22 = scalar_lea.hbm %s2334_s12, 256  ;;  %s1871_s19 = scalar_lea.hbm %s2422_s7, 512 }
 0x13d   : > { %p1868_p11 = scmp.ne.s32.totalorder %s2334_s12, %s1867_s22  ;;  %p1872_p0 = scmp.lt.s32.totalorder %s2334_s12, %s2422_s7 }
 0x13e   : > { %p1873_p1 = scmp.lt.s32.totalorder %s1871_s19, %s1867_s22 }
 0x13f   : > { %p1869_p12 = pnand %p1868_p11, %p2024_p4 }
 0x140   : > { %p1874_p2 = por %p1873_p1, %p1872_p0 }
 0x141   : > { %p1870_p13 = pneg %p1869_p12 }
 0x143   : > { %p1875_p3 = pnand %p1874_p2, %p1870_p13 }
 0x145   : > { %1878 = shalt.err (!%p1875_p3)
}
 0x146   : > { %1710 = dma.vmem_to_hbm [thread:$0]  (%p2024_p4), %s2328_s16, 256, %s2334_s12, %s1216_s23, %s2435_s1, %s2435_s1, %s1939_s18  }
 0x147 PF: > { %p1724_p5 = scmp.ge.s32.totalorder %s1933_s29, 2  ;;  %s1284_s27 = sand.u32 1, %s1913_s24  }
 0x148   : > { %s1285_s15 = scalar_lea.sflag [#allocation3], %s1284_s27 }
 0x149   : > { %p1715_p6 = pnand %p1724_p5, %p2033_p8 }
 0x14b   : > { %p1716_p7 = pneg %p1715_p6 }
 0x14d   : > { %1904 = dma.done.wait (%p1716_p7), %s1285_s15, 256  }
 0x14e   : > { %1906 = vsyncadd (%p1716_p7), %s1285_s15, 4294967040  ;;  %s2436_s11 = sadd.s32 4294967294, %s1933_s29  }
 0x14f   : > { %s1293_s20 = sand.u32 1, %s2436_s11  }
 0x150   : > { %s1294_s17 = scalar_lea.sflag [#allocation5], %s1293_s20 }
 0x151   : > { %1908 = dma.done.wait (%p1716_p7), %s1294_s17, 512  }
 0x152   : > { %1910 = vsyncadd (%p1716_p7), %s1294_s17, 4294966784  ;;  %s24_s29 = sadd.s32 1, %s1933_s29   ;;  %s2437_s24 = smov %s1917_s25 }
 0x153   : > { %p21_p4 = scmp.ge.s32.totalorder %s24_s29, 4   ;;  %s2438_s25 = smov %s1921_s26 }
 0x154   : > { %s2439_s26 = smov %s2039_s14  ;;  %s2440_s27 = smov %s1929_s28 }
 0x155   : > { %s2441_s28 = smov %s2443_s9  ;;  %23 = sbr.rel (!%p21_p4) target bundleno = 9 (0x9), region = 144 }
 0x15a   :  { %1308 = vsyncpa [#allocation3], 1 }
 0x15b   :  { %1310 = vsyncpa [#allocation3 + $0x1], 1 }
 0x15c   :  { %1311 = vsyncpa [#allocation5], 1 }
 0x15d   :  { %1313 = vsyncpa [#allocation5 + $0x1], 1 }

</bundles_post_ra>
